<compile_context>
chip_gen: v7x
topology: tpu7x:2x2x1
jax: 0.10.0
libtpu: 0.0.40
codegen_flags: <defaults>
</compile_context>

<pallas_src>
import numpy as np
import jax
import jax.numpy as jnp
from jax import lax
from jax.experimental import pallas as pl
from jax.experimental.pallas import tpu as pltpu

C_PAD = 128  # lane-dense padded feature width


# ----------------------------- Pallas kernel --------------------------------

def tide_fused_kernel(betta_ref,                                   # SMEM [NB]
                      x_in_ref, evecs_ref, a_hat_ref,              # resident
                      w_first_ref, b_first_ref, w_last_ref, b_last_ref,
                      coefs_ref, w_gcn_ref, b_gcn_ref,             # per-block (pipelined)
                      w0_ref, b0_ref, w1_ref, b1_ref, w2_ref, b2_ref,
                      o_ref,                                       # [N, C_PAD] output
                      x_sc):                                       # VMEM scratch [N, C_PAD]
    b = pl.program_id(0)

    # first_lin: runs once; x (padded to C_PAD lanes) lives in VMEM across blocks.
    @pl.when(b == 0)
    def _():
        x_sc[...] = (jnp.dot(x_in_ref[...], w_first_ref[...],
                             preferred_element_type=jnp.float32)
                     + b_first_ref[...])

    x = x_sc[...]                                                  # [N, CP]
    evecs = evecs_ref[...]                                         # [N, K]

    # Spectral diffusion. coefs_ref already holds exp(-evals ⊗ t) - alpha.
    # evecs^T @ x: contract the node axis directly (no explicit transpose).
    x_spec = lax.dot_general(evecs, x, (((0,), (0,)), ((), ())),
                             preferred_element_type=jnp.float32)   # [K, CP]
    x_dspec = coefs_ref[...] * x_spec                              # [K, CP]
    x_diffuse = jnp.dot(evecs, x_dspec,
                        preferred_element_type=jnp.float32)        # [N, CP]
    x_diffuse = x_diffuse + betta_ref[b] * x

    # GCNConv (dense normalized adjacency) + ReLU (relu twice is idempotent).
    h = jnp.dot(x_diffuse, w_gcn_ref[...], preferred_element_type=jnp.float32)
    y = jnp.maximum(jnp.dot(a_hat_ref[...], h, preferred_element_type=jnp.float32)
                    + b_gcn_ref[...], 0.0)                         # [N, CP]

    # MiniMLP on concat([x, y]) — single fused first matmul — then residual.
    xy = jnp.concatenate([x, y], axis=-1)                          # [N, 2*CP]
    z = jnp.maximum(jnp.dot(xy, w0_ref[...], preferred_element_type=jnp.float32)
                    + b0_ref[...], 0.0)
    z = jnp.maximum(jnp.dot(z, w1_ref[...], preferred_element_type=jnp.float32)
                    + b1_ref[...], 0.0)
    z = jnp.dot(z, w2_ref[...], preferred_element_type=jnp.float32) + b2_ref[...]

    x_new = z + x
    x_sc[...] = x_new

    # last_lin: runs once at the end; output lane-dense (padded), sliced outside.
    @pl.when(b == pl.num_programs(0) - 1)
    def _():
        o_ref[...] = (jnp.dot(x_new, w_last_ref[...],
                              preferred_element_type=jnp.float32)
                      + b_last_ref[...]).astype(o_ref.dtype)


# ------------------------------ JAX wrapper ----------------------------------

def _pad_to(a, shape):
    """Zero-pad array `a` up to `shape` (trailing pads only)."""
    pads = [(0, s - d) for d, s in zip(a.shape, shape)]
    return jnp.pad(a, pads)


def tide_net_forward(x_in, params, evecs, evals, a_hat):
    n, c_in = x_in.shape
    c = params["w_first"].shape[1]          # C_width
    c_out = params["w_last"].shape[1]
    k = evals.shape[0]
    nb = len(params["blocks"])
    cp = C_PAD

    # ---- pack / pad parameters (padded lanes are zero => padded cols stay 0) ----
    w_first = _pad_to(params["w_first"], (c_in, cp))
    b_first = _pad_to(params["b_first"].reshape(1, -1), (1, cp))
    w_last = _pad_to(params["w_last"], (cp, cp))
    b_last = _pad_to(params["b_last"].reshape(1, -1), (1, cp))

    def pack_block(blk):
        # precompute exp(-evals ⊗ t) - alpha outside the kernel (parameter-only)
        coefs = jnp.exp(-evals[:, None] * blk["t"][None, :]) - blk["alpha"]   # [K, C]
        w0a = _pad_to(blk["w0"][:c, :], (cp, cp))     # rows that multiply x
        w0b = _pad_to(blk["w0"][c:, :], (cp, cp))     # rows that multiply y
        return dict(
            betta=blk["betta"].astype(jnp.float32),
            coefs=_pad_to(coefs, (k, cp)),
            w_gcn=_pad_to(blk["w_gcn"], (cp, cp)),
            b_gcn=_pad_to(blk["b_gcn"].reshape(1, -1), (1, cp)),
            w0=jnp.concatenate([w0a, w0b], axis=0),   # [2*CP, CP]
            b0=_pad_to(blk["b0"].reshape(1, -1), (1, cp)),
            w1=_pad_to(blk["w1"], (cp, cp)),
            b1=_pad_to(blk["b1"].reshape(1, -1), (1, cp)),
            w2=_pad_to(blk["w2"], (cp, cp)),
            b2=_pad_to(blk["b2"].reshape(1, -1), (1, cp)),
        )

    packed = [pack_block(blk) for blk in params["blocks"]]
    st = jax.tree_util.tree_map(lambda *xs: jnp.stack(xs, axis=0), *packed)

    args = (
        st["betta"],                 # [NB]      (SMEM)
        x_in, evecs, a_hat,          # resident operands
        w_first, b_first, w_last, b_last,
        st["coefs"],                 # [NB, K, CP]
        st["w_gcn"], st["b_gcn"],    # [NB, CP, CP], [NB, 1, CP]
        st["w0"], st["b0"],          # [NB, 2CP, CP], [NB, 1, CP]
        st["w1"], st["b1"],
        st["w2"], st["b2"],
    )

    const2 = lambda i: (0, 0)        # resident across the block axis
    blk3 = lambda i: (i, 0, 0)       # per-block stacked weights

    in_specs = [
        pl.BlockSpec(memory_space=pltpu.MemorySpace.SMEM),   # betta
        pl.BlockSpec((n, c_in), const2),
        pl.BlockSpec((n, k), const2),
        pl.BlockSpec((n, n), const2),
        pl.BlockSpec((c_in, cp), const2),
        pl.BlockSpec((1, cp), const2),
        pl.BlockSpec((cp, cp), const2),
        pl.BlockSpec((1, cp), const2),
        pl.BlockSpec((None, k, cp), blk3),
        pl.BlockSpec((None, cp, cp), blk3),
        pl.BlockSpec((None, 1, cp), blk3),
        pl.BlockSpec((None, 2 * cp, cp), blk3),
        pl.BlockSpec((None, 1, cp), blk3),
        pl.BlockSpec((None, cp, cp), blk3),
        pl.BlockSpec((None, 1, cp), blk3),
        pl.BlockSpec((None, cp, cp), blk3),
        pl.BlockSpec((None, 1, cp), blk3),
    ]

    # advisory cost estimate for the XLA scheduler
    flops = 2 * n * c_in * cp + 2 * n * cp * cp                 # first/last lin
    flops += nb * (4 * n * k * cp                               # spectral project/expand
                   + 2 * n * cp * cp                            # x_diffuse @ W_gcn
                   + 2 * n * n * cp                             # A_hat @ h
                   + 4 * n * cp * cp                            # MLP layer 0 (2CP contraction)
                   + 4 * n * cp * cp)                           # MLP layers 1, 2
    bytes_accessed = sum(int(a.size) * 4 for a in args) + n * cp * 4
    cost = pl.CostEstimate(flops=flops, transcendentals=0,
                           bytes_accessed=bytes_accessed)

    out_pad = pl.pallas_call(
        tide_fused_kernel,
        out_shape=jax.ShapeDtypeStruct((n, cp), jnp.float32),
        grid_spec=pltpu.PrefetchScalarGridSpec(
            num_scalar_prefetch=0,
            grid=(nb,),
            in_specs=in_specs,
            out_specs=pl.BlockSpec((n, cp), const2),
            scratch_shapes=[pltpu.VMEM((n, cp), jnp.float32)],
        ),
        compiler_params=pltpu.CompilerParams(
            dimension_semantics=("arbitrary",),        # block axis carries x
            vmem_limit_bytes=32 * 1024 * 1024,
        ),
        cost_estimate=cost,
    )(*args)

    return out_pad[:, :c_out]


# --------------------------- pure-JAX reference ------------------------------

def tide_net_reference(x_in, params, evecs, evals, a_hat):
    hp = jax.lax.Precision.HIGHEST
    x = jnp.dot(x_in, params["w_first"], precision=hp) + params["b_first"]
    for blk in params["blocks"]:
        x_spec = jnp.dot(evecs.T, x, precision=hp)
        coefs = jnp.exp(-evals[:, None] * blk["t"][None, :])
        x_dspec = coefs * x_spec - blk["alpha"] * x_spec
        x_diffuse = jnp.dot(evecs, x_dspec, precision=hp) + blk["betta"] * x
        y = jnp.maximum(
            jnp.dot(a_hat, jnp.dot(x_diffuse, blk["w_gcn"], precision=hp),
                    precision=hp) + blk["b_gcn"], 0.0)
        feat = jnp.concatenate([x, y], axis=-1)
        z = jnp.maximum(jnp.dot(feat, blk["w0"], precision=hp) + blk["b0"], 0.0)
        z = jnp.maximum(jnp.dot(z, blk["w1"], precision=hp) + blk["b1"], 0.0)
        z = jnp.dot(z, blk["w2"], precision=hp) + blk["b2"]
        x = z + x
    return jnp.dot(x, params["w_last"], precision=hp) + params["b_last"]


# ------------------------------ Param init -----------------------------------

def init_linear_params(key, c_in, c_out):
    k1, k2 = jax.random.split(key)
    lim = 1.0 / np.sqrt(c_in)
    w = jax.random.uniform(k1, (c_in, c_out), jnp.float32, -lim, lim)
    b = jax.random.uniform(k2, (c_out,), jnp.float32, -lim, lim)
    return w, b


def init_params(key, c_in, c_width, c_out, n_block):
    keys = jax.random.split(key, 2 + n_block)
    w_first, b_first = init_linear_params(keys[0], c_in, c_width)
    w_last, b_last = init_linear_params(keys[1], c_width, c_out)
    blocks = []
    for i in range(n_block):
        bk = jax.random.split(keys[2 + i], 8)
        w_gcn, b_gcn = init_linear_params(bk[0], c_width, c_width)
        w0, b0 = init_linear_params(bk[1], 2 * c_width, c_width)   # MiniMLP layer 0
        w1, b1 = init_linear_params(bk[2], c_width, c_width)       # MiniMLP layer 1
        w2, b2 = init_linear_params(bk[3], c_width, c_width)       # MiniMLP layer 2
        blocks.append(dict(
            t=jax.random.uniform(bk[4], (c_width,), jnp.float32, 0.0, 0.5),
            alpha=jax.random.uniform(bk[5], (), jnp.float32, -0.1, 0.1),
            betta=jax.random.uniform(bk[6], (), jnp.float32, -0.1, 0.1),
            w_gcn=w_gcn, b_gcn=b_gcn,
            w0=w0, b0=b0, w1=w1, b1=b1, w2=w2, b2=b2,
        ))
    return dict(w_first=w_first, b_first=b_first,
                w_last=w_last, b_last=b_last, blocks=blocks)


def build_graph_operators(key, n_nodes, k_eig):
    """Dense analogue of gcn_norm(L.indices(), L.values()) + spectral basis."""
    k1, k2, k3 = jax.random.split(key, 3)
    adj = jax.random.uniform(k1, (n_nodes, n_nodes), jnp.float32, 0.0, 1.0)
    adj = 0.5 * (adj + adj.T) * (1.0 - jnp.eye(n_nodes, dtype=jnp.float32))
    a = adj + jnp.eye(n_nodes, dtype=jnp.float32)        # add_self_loops
    deg = a.sum(axis=0)
    dinv = 1.0 / jnp.sqrt(deg)
    a_hat = dinv[:, None] * a * dinv[None, :]            # D^-1/2 (A+I) D^-1/2
    evecs = jnp.linalg.qr(jax.random.normal(k2, (n_nodes, k_eig), jnp.float32))[0]
    evals = jnp.sort(jax.random.uniform(k3, (k_eig,), jnp.float32, 0.0, 2.0))
    return a_hat.astype(jnp.float32), evecs.astype(jnp.float32), evals


# --------------------------------- main ---------------------------------------

if __name__ == "__main__":
    N_NODES = 64     # num vertices
    K_EIG = 16       # spectral basis size
    C_IN = 4
    C_WIDTH = 32
    C_OUT = 8
    N_BLOCK = 2

    root = jax.random.PRNGKey(0)
    k_x, k_p, k_g = jax.random.split(root, 3)

    x_in = jax.random.normal(k_x, (N_NODES, C_IN), jnp.float32)
    params = init_params(k_p, C_IN, C_WIDTH, C_OUT, N_BLOCK)
    a_hat, evecs, evals = build_graph_operators(k_g, N_NODES, K_EIG)

    # TODO(synk): 'implicit_dense' branch (cholesky_solve) not implemented; only the
    #             default 'spectral' path is reproduced. Dropout is eval-mode identity.

    fwd = jax.jit(tide_net_forward)
    out = jax.block_until_ready(fwd(x_in, params, evecs, evals, a_hat))

    assert out.shape == (N_NODES, C_OUT) and out.dtype == jnp.float32
    assert bool(jnp.all(jnp.isfinite(out)))

    ref = jax.block_until_ready(tide_net_reference(x_in, params, evecs, evals, a_hat))
    np.testing.assert_allclose(np.asarray(out), np.asarray(ref), rtol=2e-3, atol=2e-3)

    print("KERNEL_OK")
</pallas_src>

<mosaic_0001>
module attributes {stable_mosaic.version = 11 : i64} {
  func.func @tide_fused_kernel(%arg0: i32, %arg1: memref<2xf32, #tpu.memory_space<smem>>, %arg2: memref<64x4xf32, #tpu.memory_space<vmem>>, %arg3: memref<64x16xf32, #tpu.memory_space<vmem>>, %arg4: memref<64x64xf32, #tpu.memory_space<vmem>>, %arg5: memref<4x128xf32, #tpu.memory_space<vmem>>, %arg6: memref<1x128xf32, #tpu.memory_space<vmem>>, %arg7: memref<128x128xf32, #tpu.memory_space<vmem>>, %arg8: memref<1x128xf32, #tpu.memory_space<vmem>>, %arg9: memref<1x16x128xf32, #tpu.memory_space<vmem>>, %arg10: memref<1x128x128xf32, #tpu.memory_space<vmem>>, %arg11: memref<1x1x128xf32, #tpu.memory_space<vmem>>, %arg12: memref<1x256x128xf32, #tpu.memory_space<vmem>>, %arg13: memref<1x1x128xf32, #tpu.memory_space<vmem>>, %arg14: memref<1x128x128xf32, #tpu.memory_space<vmem>>, %arg15: memref<1x1x128xf32, #tpu.memory_space<vmem>>, %arg16: memref<1x128x128xf32, #tpu.memory_space<vmem>>, %arg17: memref<1x1x128xf32, #tpu.memory_space<vmem>>, %arg18: memref<64x128xf32, #tpu.memory_space<vmem>>, %arg19: memref<64x128xf32, #tpu.memory_space<vmem>>) attributes {dimension_semantics = [#tpu.dimension_semantics<arbitrary>], iteration_bounds = array<i64: 2>, scalar_prefetch = 0 : i64, scratch_operands = 1 : i64, tpu.core_type = #tpu.core_type<tc>, window_params = [{transform_indices = @transform_0, window_bounds = array<i64: 2>}, {pipeline_mode = #tpu.pipeline_mode<synchronous>, transform_indices = @transform_1, window_bounds = array<i64: 64, 4>}, {pipeline_mode = #tpu.pipeline_mode<synchronous>, transform_indices = @transform_2, window_bounds = array<i64: 64, 16>}, {pipeline_mode = #tpu.pipeline_mode<synchronous>, transform_indices = @transform_3, window_bounds = array<i64: 64, 64>}, {pipeline_mode = #tpu.pipeline_mode<synchronous>, transform_indices = @transform_4, window_bounds = array<i64: 4, 128>}, {pipeline_mode = #tpu.pipeline_mode<synchronous>, transform_indices = @transform_5, window_bounds = array<i64: 1, 128>}, {pipeline_mode = #tpu.pipeline_mode<synchronous>, transform_indices = @transform_6, window_bounds = array<i64: 128, 128>}, {pipeline_mode = #tpu.pipeline_mode<synchronous>, transform_indices = @transform_7, window_bounds = array<i64: 1, 128>}, {transform_indices = @transform_8, window_bounds = array<i64: 1, 16, 128>}, {transform_indices = @transform_9, window_bounds = array<i64: 1, 128, 128>}, {transform_indices = @transform_10, window_bounds = array<i64: 1, 1, 128>}, {transform_indices = @transform_11, window_bounds = array<i64: 1, 256, 128>}, {transform_indices = @transform_12, window_bounds = array<i64: 1, 1, 128>}, {transform_indices = @transform_13, window_bounds = array<i64: 1, 128, 128>}, {transform_indices = @transform_14, window_bounds = array<i64: 1, 1, 128>}, {transform_indices = @transform_15, window_bounds = array<i64: 1, 128, 128>}, {transform_indices = @transform_16, window_bounds = array<i64: 1, 1, 128>}, {pipeline_mode = #tpu.pipeline_mode<synchronous>, transform_indices = @transform_17, window_bounds = array<i64: 64, 128>}]} {
    %c0_i32 = arith.constant 0 : i32
    %0 = arith.cmpi eq, %arg0, %c0_i32 : i32
    %1 = arith.extui %0 : i1 to i32
    %c0_i32_0 = arith.constant 0 : i32
    %2 = arith.cmpi ne, %1, %c0_i32_0 : i32
    scf.if %2 {
      %c0_45 = arith.constant 0 : index
      %c0_46 = arith.constant 0 : index
      %57 = vector.load %arg2[%c0_45, %c0_46] : memref<64x4xf32, #tpu.memory_space<vmem>>, vector<64x4xf32>
      %c0_47 = arith.constant 0 : index
      %c0_48 = arith.constant 0 : index
      %58 = vector.load %arg5[%c0_47, %c0_48] : memref<4x128xf32, #tpu.memory_space<vmem>>, vector<4x128xf32>
      %cst_49 = arith.constant dense<0.000000e+00> : vector<64x128xf32>
      %59 = tpu.matmul %57, %58, %cst_49 {dimension_numbers = #tpu.dot_dimension_numbers<[1], [0], [0], [1], [0, 0, 1, 1], [], []>} : vector<64x4xf32>, vector<4x128xf32>, vector<64x128xf32> -> vector<64x128xf32>
      %c0_50 = arith.constant 0 : index
      %c0_51 = arith.constant 0 : index
      %60 = vector.load %arg6[%c0_50, %c0_51] : memref<1x128xf32, #tpu.memory_space<vmem>>, vector<1x128xf32>
      %61 = vector.broadcast %60 : vector<1x128xf32> to vector<64x128xf32>
      %62 = arith.addf %59, %61 : vector<64x128xf32>
      %c0_52 = arith.constant 0 : index
      %c0_53 = arith.constant 0 : index
      %63 = vector.load %arg19[%c0_52, %c0_53] : memref<64x128xf32, #tpu.memory_space<vmem>>, vector<64x128xf32>
      tpu.vector_store %arg19[%c0_52, %c0_53], %62 {strides = array<i32>} : memref<64x128xf32, #tpu.memory_space<vmem>>, vector<64x128xf32>,
    } else {
    }
    %c0 = arith.constant 0 : index
    %c0_1 = arith.constant 0 : index
    %3 = vector.load %arg19[%c0, %c0_1] : memref<64x128xf32, #tpu.memory_space<vmem>>, vector<64x128xf32>
    %c0_2 = arith.constant 0 : index
    %c0_3 = arith.constant 0 : index
    %4 = vector.load %arg3[%c0_2, %c0_3] : memref<64x16xf32, #tpu.memory_space<vmem>>, vector<64x16xf32>
    %cst = arith.constant dense<0.000000e+00> : vector<16x128xf32>
    %5 = tpu.matmul %4, %3, %cst {dimension_numbers = #tpu.dot_dimension_numbers<[0], [0], [1], [1], [0, 1, 1, 1], [], []>} : vector<64x16xf32>, vector<64x128xf32>, vector<16x128xf32> -> vector<16x128xf32>
    %c0_4 = arith.constant 0 : index
    %c0_5 = arith.constant 0 : index
    %c0_6 = arith.constant 0 : index
    %6 = vector.load %arg9[%c0_4, %c0_5, %c0_6] : memref<1x16x128xf32, #tpu.memory_space<vmem>>, vector<1x16x128xf32>
    %7 = vector.shape_cast %6 : vector<1x16x128xf32> to vector<16x128xf32>
    %8 = arith.mulf %7, %5 : vector<16x128xf32>
    %cst_7 = arith.constant dense<0.000000e+00> : vector<64x128xf32>
    %9 = tpu.matmul %4, %8, %cst_7 {dimension_numbers = #tpu.dot_dimension_numbers<[1], [0], [0], [1], [0, 0, 1, 1], [], []>} : vector<64x16xf32>, vector<16x128xf32>, vector<64x128xf32> -> vector<64x128xf32>
    %10 = arith.index_cast %arg0 : i32 to index
    %11 = memref.load %arg1[%10] : memref<2xf32, #tpu.memory_space<smem>>
    %12 = vector.broadcast %11 : f32 to vector<64x128xf32>
    %13 = arith.mulf %12, %3 : vector<64x128xf32>
    %14 = arith.addf %9, %13 : vector<64x128xf32>
    %c0_8 = arith.constant 0 : index
    %c0_9 = arith.constant 0 : index
    %c0_10 = arith.constant 0 : index
    %15 = vector.load %arg10[%c0_8, %c0_9, %c0_10] : memref<1x128x128xf32, #tpu.memory_space<vmem>>, vector<1x128x128xf32>
    %16 = vector.shape_cast %15 : vector<1x128x128xf32> to vector<128x128xf32>
    %cst_11 = arith.constant dense<0.000000e+00> : vector<64x128xf32>
    %17 = tpu.matmul %14, %16, %cst_11 {dimension_numbers = #tpu.dot_dimension_numbers<[1], [0], [0], [1], [0, 0, 1, 1], [], []>} : vector<64x128xf32>, vector<128x128xf32>, vector<64x128xf32> -> vector<64x128xf32>
    %c0_12 = arith.constant 0 : index
    %c0_13 = arith.constant 0 : index
    %18 = vector.load %arg4[%c0_12, %c0_13] : memref<64x64xf32, #tpu.memory_space<vmem>>, vector<64x64xf32>
    %cst_14 = arith.constant dense<0.000000e+00> : vector<64x128xf32>
    %19 = tpu.matmul %18, %17, %cst_14 {dimension_numbers = #tpu.dot_dimension_numbers<[1], [0], [0], [1], [0, 0, 1, 1], [], []>} : vector<64x64xf32>, vector<64x128xf32>, vector<64x128xf32> -> vector<64x128xf32>
    %c0_15 = arith.constant 0 : index
    %c0_16 = arith.constant 0 : index
    %c0_17 = arith.constant 0 : index
    %20 = vector.load %arg11[%c0_15, %c0_16, %c0_17] : memref<1x1x128xf32, #tpu.memory_space<vmem>>, vector<1x1x128xf32>
    %21 = vector.shape_cast %20 : vector<1x1x128xf32> to vector<1x128xf32>
    %22 = vector.broadcast %21 : vector<1x128xf32> to vector<64x128xf32>
    %23 = arith.addf %19, %22 : vector<64x128xf32>
    %cst_18 = arith.constant 0.000000e+00 : f32
    %24 = vector.broadcast %cst_18 : f32 to vector<64x128xf32>
    %25 = arith.maximumf %23, %24 : vector<64x128xf32>
    %26 = tpu.concatenate %3, %25 in 1 : vector<64x128xf32>, vector<64x128xf32> -> vector<64x256xf32>
    %c0_19 = arith.constant 0 : index
    %c0_20 = arith.constant 0 : index
    %c0_21 = arith.constant 0 : index
    %27 = vector.load %arg12[%c0_19, %c0_20, %c0_21] : memref<1x256x128xf32, #tpu.memory_space<vmem>>, vector<1x256x128xf32>
    %28 = vector.shape_cast %27 : vector<1x256x128xf32> to vector<256x128xf32>
    %cst_22 = arith.constant dense<0.000000e+00> : vector<64x128xf32>
    %29 = tpu.matmul %26, %28, %cst_22 {dimension_numbers = #tpu.dot_dimension_numbers<[1], [0], [0], [1], [0, 0, 1, 1], [], []>} : vector<64x256xf32>, vector<256x128xf32>, vector<64x128xf32> -> vector<64x128xf32>
    %c0_23 = arith.constant 0 : index
    %c0_24 = arith.constant 0 : index
    %c0_25 = arith.constant 0 : index
    %30 = vector.load %arg13[%c0_23, %c0_24, %c0_25] : memref<1x1x128xf32, #tpu.memory_space<vmem>>, vector<1x1x128xf32>
    %31 = vector.shape_cast %30 : vector<1x1x128xf32> to vector<1x128xf32>
    %32 = vector.broadcast %31 : vector<1x128xf32> to vector<64x128xf32>
    %33 = arith.addf %29, %32 : vector<64x128xf32>
    %cst_26 = arith.constant 0.000000e+00 : f32
    %34 = vector.broadcast %cst_26 : f32 to vector<64x128xf32>
    %35 = arith.maximumf %33, %34 : vector<64x128xf32>
    %c0_27 = arith.constant 0 : index
    %c0_28 = arith.constant 0 : index
    %c0_29 = arith.constant 0 : index
    %36 = vector.load %arg14[%c0_27, %c0_28, %c0_29] : memref<1x128x128xf32, #tpu.memory_space<vmem>>, vector<1x128x128xf32>
    %37 = vector.shape_cast %36 : vector<1x128x128xf32> to vector<128x128xf32>
    %cst_30 = arith.constant dense<0.000000e+00> : vector<64x128xf32>
    %38 = tpu.matmul %35, %37, %cst_30 {dimension_numbers = #tpu.dot_dimension_numbers<[1], [0], [0], [1], [0, 0, 1, 1], [], []>} : vector<64x128xf32>, vector<128x128xf32>, vector<64x128xf32> -> vector<64x128xf32>
    %c0_31 = arith.constant 0 : index
    %c0_32 = arith.constant 0 : index
    %c0_33 = arith.constant 0 : index
    %39 = vector.load %arg15[%c0_31, %c0_32, %c0_33] : memref<1x1x128xf32, #tpu.memory_space<vmem>>, vector<1x1x128xf32>
    %40 = vector.shape_cast %39 : vector<1x1x128xf32> to vector<1x128xf32>
    %41 = vector.broadcast %40 : vector<1x128xf32> to vector<64x128xf32>
    %42 = arith.addf %38, %41 : vector<64x128xf32>
    %cst_34 = arith.constant 0.000000e+00 : f32
    %43 = vector.broadcast %cst_34 : f32 to vector<64x128xf32>
    %44 = arith.maximumf %42, %43 : vector<64x128xf32>
    %c0_35 = arith.constant 0 : index
    %c0_36 = arith.constant 0 : index
    %c0_37 = arith.constant 0 : index
    %45 = vector.load %arg16[%c0_35, %c0_36, %c0_37] : memref<1x128x128xf32, #tpu.memory_space<vmem>>, vector<1x128x128xf32>
    %46 = vector.shape_cast %45 : vector<1x128x128xf32> to vector<128x128xf32>
    %cst_38 = arith.constant dense<0.000000e+00> : vector<64x128xf32>
    %47 = tpu.matmul %44, %46, %cst_38 {dimension_numbers = #tpu.dot_dimension_numbers<[1], [0], [0], [1], [0, 0, 1, 1], [], []>} : vector<64x128xf32>, vector<128x128xf32>, vector<64x128xf32> -> vector<64x128xf32>
    %c0_39 = arith.constant 0 : index
    %c0_40 = arith.constant 0 : index
    %c0_41 = arith.constant 0 : index
    %48 = vector.load %arg17[%c0_39, %c0_40, %c0_41] : memref<1x1x128xf32, #tpu.memory_space<vmem>>, vector<1x1x128xf32>
    %49 = vector.shape_cast %48 : vector<1x1x128xf32> to vector<1x128xf32>
    %50 = vector.broadcast %49 : vector<1x128xf32> to vector<64x128xf32>
    %51 = arith.addf %47, %50 : vector<64x128xf32>
    %52 = arith.addf %51, %3 : vector<64x128xf32>
    %c0_42 = arith.constant 0 : index
    %c0_43 = arith.constant 0 : index
    %53 = vector.load %arg19[%c0_42, %c0_43] : memref<64x128xf32, #tpu.memory_space<vmem>>, vector<64x128xf32>
    tpu.vector_store %arg19[%c0_42, %c0_43], %52 {strides = array<i32>} : memref<64x128xf32, #tpu.memory_space<vmem>>, vector<64x128xf32>,
    %c1_i32 = arith.constant 1 : i32
    %54 = arith.cmpi eq, %arg0, %c1_i32 : i32
    %55 = arith.extui %54 : i1 to i32
    %c0_i32_44 = arith.constant 0 : i32
    %56 = arith.cmpi ne, %55, %c0_i32_44 : i32
    scf.if %56 {
      %c0_45 = arith.constant 0 : index
      %c0_46 = arith.constant 0 : index
      %57 = vector.load %arg7[%c0_45, %c0_46] : memref<128x128xf32, #tpu.memory_space<vmem>>, vector<128x128xf32>
      %cst_47 = arith.constant dense<0.000000e+00> : vector<64x128xf32>
      %58 = tpu.matmul %52, %57, %cst_47 {dimension_numbers = #tpu.dot_dimension_numbers<[1], [0], [0], [1], [0, 0, 1, 1], [], []>} : vector<64x128xf32>, vector<128x128xf32>, vector<64x128xf32> -> vector<64x128xf32>
      %c0_48 = arith.constant 0 : index
      %c0_49 = arith.constant 0 : index
      %59 = vector.load %arg8[%c0_48, %c0_49] : memref<1x128xf32, #tpu.memory_space<vmem>>, vector<1x128xf32>
      %60 = vector.broadcast %59 : vector<1x128xf32> to vector<64x128xf32>
      %61 = arith.addf %58, %60 : vector<64x128xf32>
      %c0_50 = arith.constant 0 : index
      %c0_51 = arith.constant 0 : index
      %62 = vector.load %arg18[%c0_50, %c0_51] : memref<64x128xf32, #tpu.memory_space<vmem>>, vector<64x128xf32>
      tpu.vector_store %arg18[%c0_50, %c0_51], %61 {strides = array<i32>} : memref<64x128xf32, #tpu.memory_space<vmem>>, vector<64x128xf32>,
    } else {
    }
    return
  }
  func.func @transform_0(%arg0: i32) -> i32 {
    %c0_i32 = arith.constant 0 : i32
    %c0_i32_0 = arith.constant 0 : i32
    return %c0_i32 : i32
  }
  func.func @transform_1(%arg0: i32) -> (i32, i32) {
    %c0_i32 = arith.constant 0 : i32
    %c0_i32_0 = arith.constant 0 : i32
    %c0_i32_1 = arith.constant 0 : i32
    return %c0_i32, %c0_i32_0 : i32, i32
  }
  func.func @transform_2(%arg0: i32) -> (i32, i32) {
    %c0_i32 = arith.constant 0 : i32
    %c0_i32_0 = arith.constant 0 : i32
    %c0_i32_1 = arith.constant 0 : i32
    return %c0_i32, %c0_i32_0 : i32, i32
  }
  func.func @transform_3(%arg0: i32) -> (i32, i32) {
    %c0_i32 = arith.constant 0 : i32
    %c0_i32_0 = arith.constant 0 : i32
    %c0_i32_1 = arith.constant 0 : i32
    return %c0_i32, %c0_i32_0 : i32, i32
  }
  func.func @transform_4(%arg0: i32) -> (i32, i32) {
    %c0_i32 = arith.constant 0 : i32
    %c0_i32_0 = arith.constant 0 : i32
    %c0_i32_1 = arith.constant 0 : i32
    return %c0_i32, %c0_i32_0 : i32, i32
  }
  func.func @transform_5(%arg0: i32) -> (i32, i32) {
    %c0_i32 = arith.constant 0 : i32
    %c0_i32_0 = arith.constant 0 : i32
    %c0_i32_1 = arith.constant 0 : i32
    return %c0_i32, %c0_i32_0 : i32, i32
  }
  func.func @transform_6(%arg0: i32) -> (i32, i32) {
    %c0_i32 = arith.constant 0 : i32
    %c0_i32_0 = arith.constant 0 : i32
    %c0_i32_1 = arith.constant 0 : i32
    return %c0_i32, %c0_i32_0 : i32, i32
  }
  func.func @transform_7(%arg0: i32) -> (i32, i32) {
    %c0_i32 = arith.constant 0 : i32
    %c0_i32_0 = arith.constant 0 : i32
    %c0_i32_1 = arith.constant 0 : i32
    return %c0_i32, %c0_i32_0 : i32, i32
  }
  func.func @transform_8(%arg0: i32) -> (i32, i32, i32) {
    %c0_i32 = arith.constant 0 : i32
    %c0_i32_0 = arith.constant 0 : i32
    %c0_i32_1 = arith.constant 0 : i32
    return %arg0, %c0_i32, %c0_i32_0 : i32, i32, i32
  }
  func.func @transform_9(%arg0: i32) -> (i32, i32, i32) {
    %c0_i32 = arith.constant 0 : i32
    %c0_i32_0 = arith.constant 0 : i32
    %c0_i32_1 = arith.constant 0 : i32
    return %arg0, %c0_i32, %c0_i32_0 : i32, i32, i32
  }
  func.func @transform_10(%arg0: i32) -> (i32, i32, i32) {
    %c0_i32 = arith.constant 0 : i32
    %c0_i32_0 = arith.constant 0 : i32
    %c0_i32_1 = arith.constant 0 : i32
    return %arg0, %c0_i32, %c0_i32_0 : i32, i32, i32
  }
  func.func @transform_11(%arg0: i32) -> (i32, i32, i32) {
    %c0_i32 = arith.constant 0 : i32
    %c0_i32_0 = arith.constant 0 : i32
    %c0_i32_1 = arith.constant 0 : i32
    return %arg0, %c0_i32, %c0_i32_0 : i32, i32, i32
  }
  func.func @transform_12(%arg0: i32) -> (i32, i32, i32) {
    %c0_i32 = arith.constant 0 : i32
    %c0_i32_0 = arith.constant 0 : i32
    %c0_i32_1 = arith.constant 0 : i32
    return %arg0, %c0_i32, %c0_i32_0 : i32, i32, i32
  }
  func.func @transform_13(%arg0: i32) -> (i32, i32, i32) {
    %c0_i32 = arith.constant 0 : i32
    %c0_i32_0 = arith.constant 0 : i32
    %c0_i32_1 = arith.constant 0 : i32
    return %arg0, %c0_i32, %c0_i32_0 : i32, i32, i32
  }
  func.func @transform_14(%arg0: i32) -> (i32, i32, i32) {
    %c0_i32 = arith.constant 0 : i32
    %c0_i32_0 = arith.constant 0 : i32
    %c0_i32_1 = arith.constant 0 : i32
    return %arg0, %c0_i32, %c0_i32_0 : i32, i32, i32
  }
  func.func @transform_15(%arg0: i32) -> (i32, i32, i32) {
    %c0_i32 = arith.constant 0 : i32
    %c0_i32_0 = arith.constant 0 : i32
    %c0_i32_1 = arith.constant 0 : i32
    return %arg0, %c0_i32, %c0_i32_0 : i32, i32, i32
  }
  func.func @transform_16(%arg0: i32) -> (i32, i32, i32) {
    %c0_i32 = arith.constant 0 : i32
    %c0_i32_0 = arith.constant 0 : i32
    %c0_i32_1 = arith.constant 0 : i32
    return %arg0, %c0_i32, %c0_i32_0 : i32, i32, i32
  }
  func.func @transform_17(%arg0: i32) -> (i32, i32) {
    %c0_i32 = arith.constant 0 : i32
    %c0_i32_0 = arith.constant 0 : i32
    %c0_i32_1 = arith.constant 0 : i32
    return %c0_i32, %c0_i32_0 : i32, i32
  }
}

</mosaic_0001>

<bundles_post_ra>
// kernel: neg.0
= control target key start
LH: loop header
LB: loop body
LE: loop exit
PB: predicated region body
PF: predicated region fallthrough
CT: control target
= control target key end

     0   :  { %s24_s0 = inlined_call_operand.vmem [shape: f32[16], index: 0, kind: input, shape index: {}]   ;;  %s25_s1 = inlined_call_operand.vmem [shape: f32[16], index: 1, kind: output, shape index: {}]  }
   0x1   :  { %v2_v0 = vld [vmem:[%s24_s0] sm:$0x1] }
   0x2   :  { %v5_v1 = vxor.u32 2147483648, %v2_v0 }
   0x4   :  { %7 = vst [vmem:[%s25_s1] sm:$0x1] %v5_v1 }

// kernel: tide_net_forward.1
= control target key start
LH: loop header
LB: loop body
LE: loop exit
PB: predicated region body
PF: predicated region fallthrough
CT: control target
= control target key end

     0   :  { %s3386_s0 = inlined_call_operand.vmem [shape: f32[2], index: 0, kind: input, shape index: {}]   ;;  %s3387_s1 = inlined_call_operand.vmem [shape: f32[64,4], index: 1, kind: input, shape index: {}]   ;;  %s3388_s2 = inlined_call_operand.vmem [shape: f32[64,16], index: 2, kind: input, shape index: {}]   ;;  %s3389_s3 = inlined_call_operand.vmem [shape: f32[64,64], index: 3, kind: input, shape index: {}]   ;;  %s3390_s4 = inlined_call_operand.vmem [shape: f32[4,128], index: 4, kind: input, shape index: {}]   ;;  %s3391_s5 = inlined_call_operand.vmem [shape: f32[1,128], index: 5, kind: input, shape index: {}]   ;;  %s3392_s6 = inlined_call_operand.vmem [shape: f32[128,128], index: 6, kind: input, shape index: {}]   ;;  %s3393_s7 = inlined_call_operand.vmem [shape: f32[1,128], index: 7, kind: input, shape index: {}]   ;;  %s3394_s8 = inlined_call_operand.vmem [shape: f32[2,16,128], index: 8, kind: input, shape index: {}]   ;;  %s3395_s9 = inlined_call_operand.vmem [shape: f32[2,128,128], index: 9, kind: input, shape index: {}]   ;;  %s3396_s10 = inlined_call_operand.vmem [shape: f32[2,1,128], index: 10, kind: input, shape index: {}]   ;;  %s3397_s11 = inlined_call_operand.vmem [shape: f32[2,256,128], index: 11, kind: input, shape index: {}]   ;;  %s3398_s12 = inlined_call_operand.vmem [shape: f32[2,1,128], index: 12, kind: input, shape index: {}]   ;;  %s3399_s13 = inlined_call_operand.vmem [shape: f32[2,128,128], index: 13, kind: input, shape index: {}]   ;;  %s3400_s14 = inlined_call_operand.vmem [shape: f32[2,1,128], index: 14, kind: input, shape index: {}]   ;;  %s3401_s15 = inlined_call_operand.vmem [shape: f32[2,128,128], index: 15, kind: input, shape index: {}]   ;;  %s3402_s16 = inlined_call_operand.vmem [shape: f32[2,1,128], index: 16, kind: input, shape index: {}]   ;;  %s3403_s17 = inlined_call_operand.vmem [shape: f32[64,128], index: 17, kind: output, shape index: {}]  }
   0x1   :  { %3409 = sst [smem:[#allocation7_spill]] %s3386_s0 }
   0x2   :  { %3410 = sst [smem:[#allocation8_spill]] %s3387_s1 }
   0x3   :  { %3411 = sst [smem:[#allocation9_spill]] %s3389_s3 }
   0x4   :  { %3412 = sst [smem:[#allocation10_spill]] %s3392_s6 }
   0x5   :  { %3413 = sst [smem:[#allocation11_spill]] %s3393_s7 }
   0x6   :  { %3414 = sst [smem:[#allocation12_spill]] %s3394_s8 }
   0x7   :  { %3415 = sst [smem:[#allocation13_spill]] %s3395_s9 }
   0x8   :  { %3416 = sst [smem:[#allocation14_spill]] %s3403_s17 }
   0x9   :  { %22 = vsyncpa [#allocation4], 0  ;;  %s2949_s24 = smov 0  }
   0xa LB: > { %3417 = sst [smem:[#allocation6_spill]] %s2856_s24  ;;  %s2955_s25 = sadd.s32 4294967295, %s2856_s24   ;;  %s2856_s24 = sphi %s2949_s24, %s28_s24  }
   0xb   : > { %p2090_p0 = scmp.ge.s32.totalorder %s2856_s24, 1  ;;  %p456_p1 = scmp.lt.s32.totalorder %s2856_s24, 3 }
   0xc   : > { %s3418_s28 = sld [smem:[#allocation7_spill]]  ;;  %p2819_p4 = scmp.eq.s32.totalorder %s2955_s25, 0 }
   0xd   : > { %p2963_p3 = pnand %p2090_p0, %p456_p1 }
   0xf   : > { %p2815_p5 = pneg %p2963_p3 }
  0x11   : > { %p2816_p6 = pnand %p2819_p4, %p2815_p5 }
  0x12   : > { %s469_s29 = sshll.u32 %s3418_s28, 4  ;;  %s470_s29 = int_to_ptr.vmem [resolvable:$true] %s469_s29 }
  0x13   : > { %s2831_s30 = scalar_lea.vmem %s470_s29, 16  ;;  %p2833_p8 = pneg %p2816_p6 }
  0x14   : > { %p2832_p7 = scmp.ne.s32.totalorder %s470_s29, %s2831_s30  ;;  %p2839_p11 = scmp.lt.s32.totalorder %s470_s29, %s470_s29 }
  0x15   : > { %p2840_p12 = scmp.lt.s32.totalorder %s2831_s30, %s2831_s30 }
  0x16   : > { %p2834_p9 = pnand %p2833_p8, %p2832_p7 }
  0x17   : > { %p2841_p13 = por %p2840_p12, %p2839_p11 }
  0x18   : > { %p2835_p10 = pneg %p2834_p9 }
  0x1a   : > { %p2842_p2 = pnand %p2841_p13, %p2835_p10 }
  0x1c   : > { %2845 = shalt.err (!%p2842_p2)
}
  0x1d   : > { %s2858_s18 = smov [#allocation3]   ;;  %567 = sbr.rel (%p2963_p3) target bundleno = 2224 (0x8b0), region = 88 }
  0x1e   : > { %2818 = dma.vmem_to_smem (!%p2816_p6), %s470_s29, 16, %s2858_s18, [#allocation4]  }
  0x24   : > { %2851 = dma.done.wait (%p2819_p4), [#allocation4], 16  }
  0x25   : > { %2853 = vsyncadd (%p2819_p4), [#allocation4], 4294967280 }
  0x26   : > { %573 = sfence }
  0x27   : > { %p647_p0 = scmp.lt.s32.totalorder %s2955_s25, 1  ;;  %s3420_s8 = sld [smem:[#allocation12_spill]] }
  0x28   : > { %s3421_s9 = sld [smem:[#allocation13_spill]]  ;;  %p3422_p1 = scmp.ne.s32.totalorder %s2955_s25, 0 }
  0x29   : > { %s2980_s19 = scalar_select %p647_p0, %s2955_s25, 1 }
  0x2a   : > { %687 = sbr.rel (%p3422_p1) target bundleno = 271 (0x10f), region = 96  ;;  %v696_v0 = vld [vmem:[%s3390_s4] sm:$0xf] (!%p3422_p1)  ;;  %vm729_vm0 = vcmask (!%p3422_p1), 1043456   ;;  %s3423_s22 = sld [smem:[#allocation8_spill]] (!%p3422_p1)  ;;  %vm704_vm1 = vcmask (!%p3422_p1), 31744  }
  0x2b   : > { %s2142_s1 = sshll.u32 %s2980_s19, 4  ;;  %s2143_s20 = sshll.u32 %s2980_s19, 7  ;;  %2344 = vmatprep.subr.msk.mxu0 (!%p3422_p1), %vm729_vm0, %v696_v0  ;;  %2793 = vmatprep.subr.msk.mxu1 (!%p3422_p1), %vm729_vm0, %v696_v0  ;;  %v2106_v9 = vld [vmem:[%s3391_s5] ss:$0 sm:$0xff] (!%p3422_p1) }
  0x2c   : > { %s2144_s18 = sshll.u32 %s2980_s19, 8  ;;  %s3011_s26 = scalar_lea.vmem %s3399_s13, %s2143_s20  ;;  %2345 = vmatpush3.msk.msra.mxu0 (!%p3422_p1), %vm729_vm0, %v696_v0  ;;  %2794 = vmatpush3.msk.msra.mxu1 (!%p3422_p1), %vm729_vm0, %v696_v0 }
  0x2d   : > { %s2987_s23 = scalar_lea.vmem %s3420_s8, %s2142_s1  ;;  %s3002_s7 = scalar_lea.vmem %s3397_s11, %s2144_s18 }
  0x2e   : > { %s2992_s28 = scalar_lea.vmem %s3421_s9, %s2143_s20  ;;  %s667_s1 = scalar_lea.vmem %s3398_s12, %s2980_s19 }
  0x2f   : > { %s675_s29 = scalar_lea.vmem %s3400_s14, %s2980_s19  ;;  %s3020_s9 = scalar_lea.vmem %s3401_s15, %s2143_s20 }
  0x30   : > { %s683_s18 = scalar_lea.vmem %s3402_s16, %s2980_s19  ;;  %v688_v1 = vld [vmem:[%s3423_s22] sm:$0xff] (!%p3422_p1)  ;;  %v689_v3 = vld [vmem:[%s3423_s22 + $0x8] sm:$0xff] (!%p3422_p1)  ;;  %v690_v5 = vld [vmem:[%s3423_s22 + $0x10] sm:$0xff] (!%p3422_p1) }
  0x31   : > { %v692_v2 = vld [vmem:[%s3423_s22 + $0x20] sm:$0xff]  ;;  %v693_v4 = vld [vmem:[%s3423_s22 + $0x28] sm:$0xff]  ;;  %v694_v6 = vld [vmem:[%s3423_s22 + $0x30] sm:$0xff]  ;;  %2346 = vmatprep.mubr.msk.f32.mxu0 %vm704_vm1, %v688_v1 }
  0x32   : > { %2352 = vmatprep.mubr.msk.f32.mxu1 %vm704_vm1, %v692_v2  ;;  %2347 = vmatmul.mubr.msk.f32.vlgmr.msra.gmra.mrb[0].mxu0 %vm704_vm1, %v689_v3  ;;  %v691_v7 = vld [vmem:[%s3423_s22 + $0x18] sm:$0xff] }
  0x33   : > { %2353 = vmatmul.mubr.msk.f32.vlgmr.msra.gmra.mrb[0].mxu1 %vm704_vm1, %v693_v4  ;;  %2349 = vmatprep.mubr.msk.f32.mxu0 %vm704_vm1, %v690_v5  ;;  %v695_v8 = vld [vmem:[%s3423_s22 + $0x38] sm:$0xff] }
  0x34   : > { %2355 = vmatprep.mubr.msk.f32.mxu1 %vm704_vm1, %v694_v6 }
  0x36   : > { %2350 = vmatmul.mubr.msk.f32.gmra.mrb[2].mxu0 %vm704_vm1, %v691_v7 }
  0x37   : > { %2356 = vmatmul.mubr.msk.f32.gmra.mrb[2].mxu1 %vm704_vm1, %v695_v8 }
 0x105   : > { %v2348_v10 = vpop.f32.mrb[0].mxu0 }
 0x106   : > { %v2354_v11 = vpop.f32.mrb[0].mxu1  ;;  %v805_v12 = vadd.f32 %v2348_v10, %v2106_v9  ;;  %v799_v14 = vpop.f32.mrb[1].mxu0 }
 0x107   : > { %v825_v13 = vadd.f32 %v2354_v11, %v2106_v9  ;;  %v819_v15 = vpop.f32.mrb[1].mxu1  ;;  %v800_v16 = vadd.f32 %v2106_v9, %v799_v14 }
 0x108   : > { %v820_v17 = vadd.f32 %v2106_v9, %v819_v15  ;;  %839 = vst [vmem:[#allocation2 + $0x8] sm:$0xff] %v805_v12 }
 0x109   : > { %843 = vst [vmem:[#allocation2 + $0x28] sm:$0xff] %v825_v13  ;;  %838 = vst [vmem:[#allocation2] sm:$0xff] %v800_v16  ;;  %v2351_v18 = vpop.f32.mrb[2].mxu0 }
 0x10a   : > { %842 = vst [vmem:[#allocation2 + $0x20] sm:$0xff] %v820_v17  ;;  %v2357_v19 = vpop.f32.mrb[2].mxu1  ;;  %v815_v20 = vadd.f32 %v2351_v18, %v2106_v9  ;;  %v809_v22 = vpop.f32.mrb[3].mxu0 }
 0x10b   : > { %v835_v21 = vadd.f32 %v2357_v19, %v2106_v9  ;;  %v829_v23 = vpop.f32.mrb[3].mxu1  ;;  %v810_v24 = vadd.f32 %v2106_v9, %v809_v22 }
 0x10c   : > { %v830_v25 = vadd.f32 %v2106_v9, %v829_v23  ;;  %841 = vst [vmem:[#allocation2 + $0x18] sm:$0xff] %v815_v20 }
 0x10d   : > { %845 = vst [vmem:[#allocation2 + $0x38] sm:$0xff] %v835_v21  ;;  %840 = vst [vmem:[#allocation2 + $0x10] sm:$0xff] %v810_v24 }
 0x10e   : > { %844 = vst [vmem:[#allocation2 + $0x30] sm:$0xff] %v830_v25 }
 0x10f PF: > { %v854_v26 = vld [vmem:[%s3388_s2] sm:$0xff]  ;;  %v855_v27 = vld [vmem:[%s3388_s2 + $0x8] sm:$0xff]  ;;  %v856_v36 = vld [vmem:[%s3388_s2 + $0x10] sm:$0xff]  ;;  %vm894_vm2 = vcmask 523264   ;;  %vm990_vm3 = vcmask 130048   ;;  %s3424_s0 = sld [smem:[#allocation9_spill]]  ;;  %s3425_s21 = scalar_lea.vmem %s3396_s10, %s2980_s19 }
 0x110   : > { %862 = vxpose.xlu0.b32.start [1/8] (short) (narrow) %v854_v26, 16  ;;  %v3072_v28 = vld [vmem:[#allocation2] sm:$0xff]  ;;  %v3074_v29 = vld [vmem:[#allocation2 + $0x8] sm:$0xff]  ;;  %v857_v40 = vld [vmem:[%s3388_s2 + $0x18] sm:$0xff]  ;;  %p2138_p2 = scmp.ne.s32.totalorder %s2955_s25, 1 }
 0x111   : > { %v2597_v32 = vpack.c.bf16 %v3074_v29, %v3072_v28  ;;  %v3084_v34 = vld [vmem:[#allocation2 + $0x20] sm:$0xff]  ;;  %v3086_v35 = vld [vmem:[#allocation2 + $0x28] sm:$0xff]  ;;  %v860_v44 = vld [vmem:[%s3388_s2 + $0x30] sm:$0xff]  ;;  %s3426_s20 = sld [smem:[#allocation10_spill]] (!%p2138_p2) }
 0x112   : > { %v2605_v37 = vpack.c.bf16 %v3086_v35, %v3084_v34  ;;  %v858_v42 = vld [vmem:[%s3388_s2 + $0x20] sm:$0xff]  ;;  %v859_v43 = vld [vmem:[%s3388_s2 + $0x28] sm:$0xff]  ;;  %v861_v45 = vld [vmem:[%s3388_s2 + $0x38] sm:$0xff] }
 0x113   : > { %v3078_v31 = vld [vmem:[#allocation2 + $0x18] sm:$0xff]  ;;  %2598 = vmatprep.subr.bf16.mxu1 %v2597_v32  ;;  %v977_v48 = vld [vmem:[%s2987_s23 + $0x8] sm:$0xff]  ;;  %v976_v49 = vld [vmem:[%s2987_s23] sm:$0xff]  ;;  %s980_s23 = sld [smem:[#allocation3 + %s2955_s25]] }
 0x114   : > { %v3076_v30 = vld [vmem:[#allocation2 + $0x10] sm:$0xff]  ;;  %863 = vxpose.xlu0.b32.cont [2/8] (short) (narrow) %v855_v27, 16  ;;  %2600 = vmatpush3.bf16.msra.mxu1 %v2597_v32  ;;  %v3095_v39 = vld [vmem:[#allocation2 + $0x38] sm:$0xff]  ;;  %v1120_v53 = vld [vmem:[%s2992_s28] sm:$0xff] }
 0x115   : > { %v2601_v33 = vpack.c.bf16 %v3078_v31, %v3076_v30  ;;  %v3093_v38 = vld [vmem:[#allocation2 + $0x30] sm:$0xff]  ;;  %v1121_v54 = vld [vmem:[%s2992_s28 + $0x8] sm:$0xff]  ;;  %v1123_v59 = vld [vmem:[%s2992_s28 + $0x18] sm:$0xff] }
 0x116   : > { %v2609_v41 = vpack.c.bf16 %v3095_v39, %v3093_v38  ;;  %v2617_v57 = vpack.c.bf16 %v1121_v54, %v1120_v53  ;;  %v1122_v58 = vld [vmem:[%s2992_s28 + $0x10] sm:$0xff]  ;;  %v1124_v61 = vld [vmem:[%s2992_s28 + $0x20] sm:$0xff]  ;;  %v1125_v62 = vld [vmem:[%s2992_s28 + $0x28] sm:$0xff] }
 0x117   : > { %2602 = vmatprep.subr.bf16.mxu1 %v2601_v33  ;;  %v2621_v60 = vpack.c.bf16 %v1123_v59, %v1122_v58  ;;  %v2625_v63 = vpack.c.bf16 %v1125_v62, %v1124_v61  ;;  %v1126_v0 = vld [vmem:[%s2992_s28 + $0x30] sm:$0xff]  ;;  %v1127_v1 = vld [vmem:[%s2992_s28 + $0x38] sm:$0xff]  ;;  %v1128_v3 = vld [vmem:[%s2992_s28 + $0x40] sm:$0xff] }
 0x118   : > { %864 = vxpose.xlu0.b32.cont [3/8] (short) (narrow) %v856_v36, 16  ;;  %2604 = vmatpush3.bf16.msra.mxu1 %v2601_v33  ;;  %v2629_v2 = vpack.c.bf16 %v1127_v1, %v1126_v0  ;;  %v1129_v4 = vld [vmem:[%s2992_s28 + $0x48] sm:$0xff]  ;;  %v1130_v6 = vld [vmem:[%s2992_s28 + $0x50] sm:$0xff]  ;;  %v1131_v7 = vld [vmem:[%s2992_s28 + $0x58] sm:$0xff] }
 0x119   : > { %2606 = vmatprep.subr.bf16.mxu1 %v2605_v37  ;;  %v2633_v5 = vpack.c.bf16 %v1129_v4, %v1128_v3  ;;  %v2637_v8 = vpack.c.bf16 %v1131_v7, %v1130_v6  ;;  %v1132_v9 = vld [vmem:[%s2992_s28 + $0x60] sm:$0xff]  ;;  %v1133_v10 = vld [vmem:[%s2992_s28 + $0x68] sm:$0xff]  ;;  %v1134_v12 = vld [vmem:[%s2992_s28 + $0x70] sm:$0xff]  ;;  %v981_v15 = vstv %s980_s23 }
 0x11a   : > { %v2641_v11 = vpack.c.bf16 %v1133_v10, %v1132_v9  ;;  %v1135_v13 = vld [vmem:[%s2992_s28 + $0x78] sm:$0xff]  ;;  %v982_v16 = vmul.f32 %v981_v15, %v3072_v28  ;;  %v983_v17 = vmul.f32 %v981_v15, %v3074_v29  ;;  %v984_v21 = vmul.f32 %v981_v15, %v3076_v30  ;;  %v1409_v58 = vld [vmem:[%s3002_s7 + $0x80] sm:$0xff]  ;;  %v1410_v59 = vld [vmem:[%s3002_s7 + $0x88] sm:$0xff] }
 0x11b   : > { %v2645_v14 = vpack.c.bf16 %v1135_v13, %v1134_v12  ;;  %v985_v23 = vmul.f32 %v981_v15, %v3078_v31  ;;  %v987_v33 = vmul.f32 %v981_v15, %v3086_v35  ;;  %v1393_v0 = vld [vmem:[%s3002_s7] sm:$0xff]  ;;  %v1394_v1 = vld [vmem:[%s3002_s7 + $0x8] sm:$0xff]  ;;  %v1412_v3 = vld [vmem:[%s3002_s7 + $0x98] sm:$0xff] }
 0x11c   : > { %865 = vxpose.xlu0.b32.cont [4/8] (short) (narrow) %v857_v40, 16  ;;  %2608 = vmatpush3.bf16.msra.mxu1 %v2605_v37  ;;  %v1242_v4 = vld [vmem:[%s3424_s0 + $0x8] sm:$0xff]  ;;  %v1243_v6 = vld [vmem:[%s3424_s0 + $0x10] sm:$0xff]  ;;  %v1396_v9 = vld [vmem:[%s3002_s7 + $0x18] sm:$0xff] }
 0x11d   : > { %2610 = vmatprep.subr.bf16.mxu1 %v2609_v41  ;;  %v1413_v10 = vld [vmem:[%s3002_s7 + $0xa0] sm:$0xff]  ;;  %v1244_v12 = vld [vmem:[%s3424_s0 + $0x18] sm:$0xff] }
 0x120   : > { %866 = vxpose.xlu0.b32.cont [5/8] (short) (narrow) %v858_v42, 16  ;;  %2612 = vmatpush3.bf16.msra.mxu1 %v2609_v41  ;;  %v988_v41 = vmul.f32 %v981_v15, %v3093_v38 }
 0x124   : > { %867 = vxpose.xlu0.b32.cont [6/8] (short) (narrow) %v859_v43, 16 }
 0x128   : > { %868 = vxpose.xlu0.b32.cont [7/8] (short) (narrow) %v860_v44, 16 }
 0x12c   : > { %869 = vxpose.xlu0.b32.end [8/8] (short) (narrow) %v861_v45, 16 }
 0x190   : > { %v878_v46 = vpop.trf.xlu0 }
 0x191   : > { %2374 = vmatprep.mubr.msk.f32.mxu1 %vm894_vm2, %v878_v46 }
 0x194   : > { %v879_v47 = vpop.trf.xlu0 }
 0x195   : > { %2375 = vmatmul.mubr.msk.f32.vlgmr.msra.gmra.mrb[0].mxu1 %vm894_vm2, %v879_v47 }
 0x196   : > { %2381 = vmatprep.mubr.msk.f32.mxu1 %vm990_vm3, %v854_v26 }
 0x268   : > { %v2376_v50 = vpop.f32.mrb[0].mxu1 }
 0x269   : > { %v979_v51 = vmul.f32 %v2376_v50, %v977_v48  ;;  %v967_v52 = vpop.f32.mrb[1].mxu1  ;;  %v1241_v48 = vld [vmem:[%s3424_s0] sm:$0xff] }
 0x26a   : > { %v978_v55 = vmul.f32 %v976_v49, %v967_v52  ;;  %2453 = vmatprep.mubr.msk.f32.mxu0 %vm894_vm2, %v1241_v48  ;;  %v1422_v48 = vld [vmem:[%s3002_s7 + $0xe8] sm:$0xff] }
 0x26c   : > { %v2613_v56 = vpack.c.bf16 %v979_v51, %v978_v55 }
 0x26e   : > { %2614 = vmatprep.subr.bf16.mxu1 %v2613_v56 }
 0x26f   : > { %2616 = vmatpush3.bf16.msra.mxu1 %v2613_v56 }
 0x270   : > { %2618 = vmatprep.subr.bf16.mxu1 %v2617_v57 }
 0x272   : > { %2382 = vmatmul.mubr.msk.f32.vlgmr.msra.gmra.mrb[2].mxu1 %vm990_vm3, %v855_v27  ;;  %v986_v27 = vmul.f32 %v981_v15, %v3084_v34 }
 0x273   : > { %2384 = vmatprep.mubr.msk.f32.mxu1 %vm990_vm3, %v856_v36  ;;  %2620 = vmatpush3.bf16.msra.mxu1 %v2617_v57 }
 0x274   : > { %2622 = vmatprep.subr.bf16.mxu1 %v2621_v60 }
 0x276   : > { %2385 = vmatmul.mubr.msk.f32.gmra.mrb[4].mxu1 %vm990_vm3, %v857_v40 }
 0x277   : > { %2387 = vmatprep.mubr.msk.f32.mxu1 %vm990_vm3, %v858_v42  ;;  %2624 = vmatpush3.bf16.msra.mxu1 %v2621_v60 }
 0x278   : > { %2626 = vmatprep.subr.bf16.mxu1 %v2625_v63 }
 0x27a   : > { %2388 = vmatmul.mubr.msk.f32.gmra.mrb[6].mxu1 %vm990_vm3, %v859_v43  ;;  %v989_v43 = vmul.f32 %v981_v15, %v3095_v39 }
 0x27b   : > { %2390 = vmatprep.mubr.msk.f32.mxu1 %vm990_vm3, %v860_v44  ;;  %2628 = vmatpush3.bf16.msra.mxu1 %v2625_v63  ;;  %v2665_v63 = vpack.c.bf16 %v1410_v59, %v1409_v58  ;;  %v1408_v58 = vld [vmem:[%s3002_s7 + $0x78] sm:$0xff] }
 0x27c   : > { %2630 = vmatprep.subr.bf16.mxu1 %v2629_v2 }
 0x27e   : > { %2391 = vmatmul.mubr.msk.f32.gmra.mrb[8].mxu1 %vm990_vm3, %v861_v45 }
 0x27f   : > { %2632 = vmatpush3.bf16.msra.mxu1 %v2629_v2  ;;  %v1411_v2 = vld [vmem:[%s3002_s7 + $0x90] sm:$0xff] }
 0x280   : > { %2634 = vmatprep.subr.bf16.mxu1 %v2633_v5  ;;  %v2669_v7 = vpack.c.bf16 %v1412_v3, %v1411_v2  ;;  %v1549_v2 = vld [vmem:[%s3011_s26 + $0x20] sm:$0xff]  ;;  %v1550_v3 = vld [vmem:[%s3011_s26 + $0x28] sm:$0xff] }
 0x283   : > { %2636 = vmatpush3.bf16.msra.mxu1 %v2633_v5  ;;  %v2667_v5 = vpack.c.bf16 %v1394_v1, %v1393_v0  ;;  %v1548_v0 = vld [vmem:[%s3011_s26 + $0x18] sm:$0xff] }
 0x284   : > { %2638 = vmatprep.subr.bf16.mxu1 %v2637_v8 }
 0x287   : > { %2640 = vmatpush3.bf16.msra.mxu1 %v2637_v8  ;;  %v1395_v8 = vld [vmem:[%s3002_s7 + $0x10] sm:$0xff] }
 0x288   : > { %2642 = vmatprep.subr.bf16.mxu1 %v2641_v11  ;;  %v2671_v13 = vpack.c.bf16 %v1396_v9, %v1395_v8  ;;  %v1553_v8 = vld [vmem:[%s3011_s26 + $0x40] sm:$0xff]  ;;  %v1554_v9 = vld [vmem:[%s3011_s26 + $0x48] sm:$0xff] }
 0x28b   : > { %2644 = vmatpush3.bf16.msra.mxu1 %v2641_v11  ;;  %v1414_v11 = vld [vmem:[%s3002_s7 + $0xa8] sm:$0xff] }
 0x28c   : > { %2646 = vmatprep.subr.bf16.mxu1 %v2645_v14  ;;  %v2673_v15 = vpack.c.bf16 %v1414_v11, %v1413_v10  ;;  %v2713_v10 = vpack.c.bf16 %v1554_v9, %v1553_v8  ;;  %v2126_v11 = vld [vmem:[%s3425_s21] ss:$0 sm:$0xff]  ;;  %v1694_v8 = vld [vmem:[%s3020_s9 + $0x68] sm:$0xff] }
 0x28f   : > { %2648 = vmatpush3.bf16.msra.mxu1 %v2645_v14  ;;  %v1245_v14 = vld [vmem:[%s3424_s0 + $0x20] sm:$0xff] }
 0x345   : > { %v2383_v18 = vpop.f32.mrb[2].mxu1 }
 0x346   : > { %v1081_v19 = vpop.f32.mrb[3].mxu1  ;;  %v1087_v22 = vadd.f32 %v2383_v18, %v983_v17  ;;  %v1398_v17 = vld [vmem:[%s3002_s7 + $0x28] sm:$0xff]  ;;  %v1415_v18 = vld [vmem:[%s3002_s7 + $0xb0] sm:$0xff] }
 0x347   : > { %v1082_v20 = vadd.f32 %v1081_v19, %v982_v16  ;;  %v1397_v16 = vld [vmem:[%s3002_s7 + $0x20] sm:$0xff]  ;;  %v1416_v19 = vld [vmem:[%s3002_s7 + $0xb8] sm:$0xff] }
 0x349   : > { %v2386_v24 = vpop.f32.mrb[4].mxu1  ;;  %2425 = vmatprep.mubr.f32.mxu1 %v1082_v20  ;;  %v1246_v20 = vld [vmem:[%s3424_s0 + $0x28] sm:$0xff] }
 0x34a   : > { %v1091_v25 = vpop.f32.mrb[5].mxu1  ;;  %2426 = vmatmul.mubr.f32.vlgmr.msra.gmra.mrb[10].mxu1 %v1087_v22  ;;  %v1097_v32 = vadd.f32 %v2386_v24, %v985_v23  ;;  %v1247_v22 = vld [vmem:[%s3424_s0 + $0x30] sm:$0xff]  ;;  %v2677_v23 = vpack.c.bf16 %v1416_v19, %v1415_v18 }
 0x34b   : > { %v1092_v26 = vadd.f32 %v1091_v25, %v984_v21  ;;  %v2675_v21 = vpack.c.bf16 %v1398_v17, %v1397_v16  ;;  %v1399_v24 = vld [vmem:[%s3002_s7 + $0x30] sm:$0xff]  ;;  %v1400_v25 = vld [vmem:[%s3002_s7 + $0x38] sm:$0xff] }
 0x34d   : > { %v2389_v36 = vpop.f32.mrb[6].mxu1  ;;  %2428 = vmatprep.mubr.f32.mxu1 %v1092_v26  ;;  %v1417_v26 = vld [vmem:[%s3002_s7 + $0xc0] sm:$0xff] }
 0x34e   : > { %v1101_v37 = vpop.f32.mrb[7].mxu1  ;;  %2429 = vmatmul.mubr.f32.gmra.mrb[12].mxu1 %v1097_v32  ;;  %v1107_v42 = vadd.f32 %v2389_v36, %v987_v33  ;;  %v1248_v32 = vld [vmem:[%s3424_s0 + $0x38] sm:$0xff]  ;;  %v2679_v33 = vpack.c.bf16 %v1400_v25, %v1399_v24 }
 0x34f   : > { %v1102_v40 = vadd.f32 %v1101_v37, %v986_v27  ;;  %v1418_v27 = vld [vmem:[%s3002_s7 + $0xc8] sm:$0xff]  ;;  %v1401_v37 = vld [vmem:[%s3002_s7 + $0x40] sm:$0xff] }
 0x350   : > { %v2681_v36 = vpack.c.bf16 %v1418_v27, %v1417_v26 }
 0x351   : > { %v2392_v44 = vpop.f32.mrb[8].mxu1  ;;  %2431 = vmatprep.mubr.f32.mxu1 %v1102_v40  ;;  %v1402_v40 = vld [vmem:[%s3002_s7 + $0x48] sm:$0xff] }
 0x352   : > { %v1111_v45 = vpop.f32.mrb[9].mxu1  ;;  %2432 = vmatmul.mubr.f32.gmra.mrb[14].mxu1 %v1107_v42  ;;  %v1117_v47 = vadd.f32 %v2392_v44, %v989_v43  ;;  %v1420_v42 = vld [vmem:[%s3002_s7 + $0xd8] sm:$0xff]  ;;  %v2683_v43 = vpack.c.bf16 %v1402_v40, %v1401_v37 }
 0x353   : > { %v1112_v46 = vadd.f32 %v1111_v45, %v988_v41  ;;  %v1419_v41 = vld [vmem:[%s3002_s7 + $0xd0] sm:$0xff] }
 0x354   : > { %v2685_v44 = vpack.c.bf16 %v1420_v42, %v1419_v41  ;;  %v1403_v45 = vld [vmem:[%s3002_s7 + $0x50] sm:$0xff] }
 0x355   : > { %2434 = vmatprep.mubr.f32.mxu1 %v1112_v46  ;;  %v1404_v46 = vld [vmem:[%s3002_s7 + $0x58] sm:$0xff] }
 0x356   : > { %2435 = vmatmul.mubr.f32.gmra.mrb[16].mxu1 %v1117_v47  ;;  %v1421_v47 = vld [vmem:[%s3002_s7 + $0xe0] sm:$0xff] }
 0x41d   : > { %v2427_v49 = vpop.f32.mrb[10].mxu1 }
 0x41e   : > { %v1202_v50 = vpop.f32.mrb[11].mxu1 }
 0x41f   : > { %v2649_v51 = vpack.c.bf16 %v2427_v49, %v1202_v50  ;;  %v2687_v49 = vpack.c.bf16 %v1404_v46, %v1403_v45  ;;  %v2689_v50 = vpack.c.bf16 %v1422_v48, %v1421_v47  ;;  %v1556_v45 = vld [vmem:[%s3011_s26 + $0x58] sm:$0xff]  ;;  %v1557_v47 = vld [vmem:[%s3011_s26 + $0x60] sm:$0xff]  ;;  %v1558_v48 = vld [vmem:[%s3011_s26 + $0x68] sm:$0xff] }
 0x421   : > { %v2430_v52 = vpop.f32.mrb[12].mxu1  ;;  %2650 = vmatprep.subr.bf16.mxu0 %v2649_v51 }
 0x422   : > { %v1212_v53 = vpop.f32.mrb[13].mxu1  ;;  %2652 = vmatpush3.bf16.msra.mxu0 %v2649_v51  ;;  %v1405_v51 = vld [vmem:[%s3002_s7 + $0x60] sm:$0xff] }
 0x423   : > { %v2653_v54 = vpack.c.bf16 %v2430_v52, %v1212_v53  ;;  %v1406_v52 = vld [vmem:[%s3002_s7 + $0x68] sm:$0xff] }
 0x424   : > { %v2691_v53 = vpack.c.bf16 %v1406_v52, %v1405_v51  ;;  %v1560_v51 = vld [vmem:[%s3011_s26 + $0x78] sm:$0xff] }
 0x425   : > { %v2433_v55 = vpop.f32.mrb[14].mxu1  ;;  %2654 = vmatprep.subr.bf16.mxu0 %v2653_v54 }
 0x426   : > { %v1222_v56 = vpop.f32.mrb[15].mxu1  ;;  %2656 = vmatpush3.bf16.msra.mxu0 %v2653_v54  ;;  %v1423_v54 = vld [vmem:[%s3002_s7 + $0xf0] sm:$0xff] }
 0x427   : > { %v2657_v57 = vpack.c.bf16 %v2433_v55, %v1222_v56  ;;  %v1424_v55 = vld [vmem:[%s3002_s7 + $0xf8] sm:$0xff] }
 0x428   : > { %v2693_v56 = vpack.c.bf16 %v1424_v55, %v1423_v54  ;;  %v1682_v54 = vld [vmem:[%s3020_s9 + $0x8] sm:$0xff]  ;;  %v1683_v55 = vld [vmem:[%s3020_s9 + $0x10] sm:$0xff] }
 0x429   : > { %v2436_v60 = vpop.f32.mrb[16].mxu1  ;;  %2658 = vmatprep.subr.bf16.mxu0 %v2657_v57 }
 0x42a   : > { %v1232_v61 = vpop.f32.mrb[17].mxu1  ;;  %2660 = vmatpush3.bf16.msra.mxu0 %v2657_v57  ;;  %v1407_v57 = vld [vmem:[%s3002_s7 + $0x70] sm:$0xff] }
 0x42b   : > { %v2661_v62 = vpack.c.bf16 %v2436_v60, %v1232_v61  ;;  %v2695_v59 = vpack.c.bf16 %v1408_v58, %v1407_v57  ;;  %v1545_v60 = vld [vmem:[%s3011_s26] sm:$0xff]  ;;  %v1546_v61 = vld [vmem:[%s3011_s26 + $0x8] sm:$0xff]  ;;  %v1684_v57 = vld [vmem:[%s3020_s9 + $0x18] sm:$0xff] }
 0x42c   : > { %v2733_v58 = vpack.c.bf16 %v1684_v57, %v1683_v55 }
 0x42d   : > { %2662 = vmatprep.subr.bf16.mxu0 %v2661_v62 }
 0x42e   : > { %2664 = vmatpush3.bf16.msra.mxu0 %v2661_v62  ;;  %v1547_v62 = vld [vmem:[%s3011_s26 + $0x10] sm:$0xff] }
 0x42f   : > { %2666 = vmatprep.subr.bf16.mxu0 %v2665_v63  ;;  %v2697_v63 = vpack.c.bf16 %v1546_v61, %v1545_v60  ;;  %v2701_v1 = vpack.c.bf16 %v1548_v0, %v1547_v62  ;;  %v1686_v60 = vld [vmem:[%s3020_s9 + $0x28] sm:$0xff]  ;;  %v1687_v62 = vld [vmem:[%s3020_s9 + $0x30] sm:$0xff] }
 0x431   : > { %2454 = vmatmul.mubr.msk.f32.vlgmr.msra.gmra.mrb[0].mxu0 %vm894_vm2, %v1242_v4  ;;  %2698 = vmatprep.subr.bf16.mxu1 %v2697_v63  ;;  %v2705_v4 = vpack.c.bf16 %v1550_v3, %v1549_v2  ;;  %v1690_v2 = vld [vmem:[%s3020_s9 + $0x48] sm:$0xff] }
 0x432   : > { %2456 = vmatprep.mubr.msk.f32.mxu0 %vm894_vm2, %v1243_v6  ;;  %2668 = vmatpush3.bf16.msra.mxu0 %v2667_v5  ;;  %v1551_v5 = vld [vmem:[%s3011_s26 + $0x30] sm:$0xff]  ;;  %v1552_v6 = vld [vmem:[%s3011_s26 + $0x38] sm:$0xff] }
 0x433   : > { %2670 = vmatprep.subr.bf16.mxu0 %v2669_v7  ;;  %2700 = vmatpush3.bf16.msra.mxu1 %v2697_v63  ;;  %v2709_v7 = vpack.c.bf16 %v1552_v6, %v1551_v5  ;;  %v1688_v63 = vld [vmem:[%s3020_s9 + $0x38] sm:$0xff] }
 0x434   : > { %2702 = vmatprep.subr.bf16.mxu1 %v2701_v1  ;;  %v2741_v0 = vpack.c.bf16 %v1688_v63, %v1687_v62  ;;  %v1692_v5 = vld [vmem:[%s3020_s9 + $0x58] sm:$0xff]  ;;  %v2136_v62 = vld [vmem:[%s675_s29] ss:$0 sm:$0xff] }
 0x435   : > { %2457 = vmatmul.mubr.msk.f32.gmra.mrb[2].mxu0 %vm894_vm2, %v1244_v12 }
 0x436   : > { %2459 = vmatprep.mubr.msk.f32.mxu0 %vm894_vm2, %v1245_v14  ;;  %2672 = vmatpush3.bf16.msra.mxu0 %v2671_v13 }
 0x437   : > { %2674 = vmatprep.subr.bf16.mxu0 %v2673_v15  ;;  %2704 = vmatpush3.bf16.msra.mxu1 %v2701_v1  ;;  %v1689_v1 = vld [vmem:[%s3020_s9 + $0x40] sm:$0xff] }
 0x438   : > { %2706 = vmatprep.subr.bf16.mxu1 %v2705_v4  ;;  %v2745_v3 = vpack.c.bf16 %v1690_v2, %v1689_v1 }
 0x439   : > { %2460 = vmatmul.mubr.msk.f32.gmra.mrb[4].mxu0 %vm894_vm2, %v1246_v20 }
 0x43a   : > { %2462 = vmatprep.mubr.msk.f32.mxu0 %vm894_vm2, %v1247_v22  ;;  %2676 = vmatpush3.bf16.msra.mxu0 %v2675_v21 }
 0x43b   : > { %2678 = vmatprep.subr.bf16.mxu0 %v2677_v23  ;;  %2708 = vmatpush3.bf16.msra.mxu1 %v2705_v4  ;;  %v1691_v4 = vld [vmem:[%s3020_s9 + $0x50] sm:$0xff] }
 0x43c   : > { %2710 = vmatprep.subr.bf16.mxu1 %v2709_v7  ;;  %v2749_v6 = vpack.c.bf16 %v1692_v5, %v1691_v4 }
 0x43d   : > { %2463 = vmatmul.mubr.msk.f32.gmra.mrb[6].mxu0 %vm894_vm2, %v1248_v32 }
 0x43e   : > { %2680 = vmatpush3.bf16.msra.mxu0 %v2679_v33 }
 0x43f   : > { %2682 = vmatprep.subr.bf16.mxu0 %v2681_v36  ;;  %2712 = vmatpush3.bf16.msra.mxu1 %v2709_v7  ;;  %v1693_v7 = vld [vmem:[%s3020_s9 + $0x60] sm:$0xff] }
 0x440   : > { %2714 = vmatprep.subr.bf16.mxu1 %v2713_v10  ;;  %v2753_v9 = vpack.c.bf16 %v1694_v8, %v1693_v7 }
 0x442   : > { %2684 = vmatpush3.bf16.msra.mxu0 %v2683_v43 }
 0x443   : > { %2686 = vmatprep.subr.bf16.mxu0 %v2685_v44  ;;  %2716 = vmatpush3.bf16.msra.mxu1 %v2713_v10  ;;  %v1555_v44 = vld [vmem:[%s3011_s26 + $0x50] sm:$0xff] }
 0x444   : > { %v2717_v46 = vpack.c.bf16 %v1556_v45, %v1555_v44 }
 0x446   : > { %2688 = vmatpush3.bf16.msra.mxu0 %v2687_v49  ;;  %2718 = vmatprep.subr.bf16.mxu1 %v2717_v46  ;;  %v2721_v49 = vpack.c.bf16 %v1558_v48, %v1557_v47 }
 0x447   : > { %2690 = vmatprep.subr.bf16.mxu0 %v2689_v50  ;;  %2720 = vmatpush3.bf16.msra.mxu1 %v2717_v46  ;;  %v1559_v50 = vld [vmem:[%s3011_s26 + $0x70] sm:$0xff] }
 0x448   : > { %2722 = vmatprep.subr.bf16.mxu1 %v2721_v49  ;;  %v2725_v52 = vpack.c.bf16 %v1560_v51, %v1559_v50 }
 0x44a   : > { %2692 = vmatpush3.bf16.msra.mxu0 %v2691_v53  ;;  %v1681_v53 = vld [vmem:[%s3020_s9] sm:$0xff] }
 0x44b   : > { %2694 = vmatprep.subr.bf16.mxu0 %v2693_v56  ;;  %2724 = vmatpush3.bf16.msra.mxu1 %v2721_v49  ;;  %v2729_v56 = vpack.c.bf16 %v1682_v54, %v1681_v53 }
 0x44c   : > { %2726 = vmatprep.subr.bf16.mxu1 %v2725_v52 }
 0x44e   : > { %2696 = vmatpush3.bf16.msra.mxu0 %v2695_v59  ;;  %v1685_v59 = vld [vmem:[%s3020_s9 + $0x20] sm:$0xff] }
 0x44f   : > { %2728 = vmatpush3.bf16.msra.mxu1 %v2725_v52  ;;  %2730 = vmatprep.subr.bf16.mxu0 %v2729_v56  ;;  %v2737_v61 = vpack.c.bf16 %v1686_v60, %v1685_v59  ;;  %v1695_v59 = vld [vmem:[%s3020_s9 + $0x70] sm:$0xff]  ;;  %v1696_v60 = vld [vmem:[%s3020_s9 + $0x78] sm:$0xff]  ;;  %s3427_s9 = sld [smem:[#allocation11_spill]] (!%p2138_p2) }
 0x504   : > { %v2455_v12 = vpop.f32.mrb[0].mxu0 }
 0x505   : > { %v1346_v13 = vpop.f32.mrb[1].mxu0  ;;  %v1352_v14 = vadd.f32 %v2455_v12, %v2126_v11 }
 0x506   : > { %v1347_v15 = vadd.f32 %v2126_v11, %v1346_v13 }
 0x507   : > { %v1386_v19 = vmax.f32 %v1352_v14, 0.0 }
 0x508   : > { %v1385_v16 = vmax.f32 %v1347_v15, 0.0  ;;  %v2458_v17 = vpop.f32.mrb[2].mxu0 }
 0x509   : > { %v1356_v18 = vpop.f32.mrb[3].mxu0  ;;  %v1362_v24 = vadd.f32 %v2458_v17, %v2126_v11 }
 0x50a   : > { %1496 = vmatprep.mubr.f32.mxu0 %v1385_v16  ;;  %v1357_v20 = vadd.f32 %v2126_v11, %v1356_v18 }
 0x50b   : > { %1497 = vmatmul.mubr.f32.vlgmr.msra.gmra.mrb[8].mxu0 %v3072_v28  ;;  %v1388_v32 = vmax.f32 %v1362_v24, 0.0 }
 0x50c   : > { %1501 = vmatprep.mubr.f32.mxu0 %v1386_v19  ;;  %v1387_v21 = vmax.f32 %v1357_v20, 0.0  ;;  %v2461_v22 = vpop.f32.mrb[4].mxu0  ;;  %2732 = vmatpush3.bf16.msra.mxu0 %v2729_v56 }
 0x50d   : > { %v1366_v23 = vpop.f32.mrb[5].mxu0  ;;  %v1372_v36 = vadd.f32 %v2461_v22, %v2126_v11  ;;  %2734 = vmatprep.subr.bf16.mxu0 %v2733_v58 }
 0x50e   : > { %v1367_v25 = vadd.f32 %v2126_v11, %v1366_v23 }
 0x50f   : > { %1502 = vmatmul.mubr.f32.gmra.mrb[10].mxu0 %v3074_v29  ;;  %v1390_v40 = vmax.f32 %v1372_v36, 0.0 }
 0x510   : > { %1506 = vmatprep.mubr.f32.mxu0 %v1387_v21  ;;  %v2464_v26 = vpop.f32.mrb[6].mxu0  ;;  %v1389_v33 = vmax.f32 %v1367_v25, 0.0  ;;  %2736 = vmatpush3.bf16.msra.mxu0 %v2733_v58 }
 0x511   : > { %v1376_v27 = vpop.f32.mrb[7].mxu0  ;;  %v1382_v42 = vadd.f32 %v2464_v26, %v2126_v11  ;;  %2738 = vmatprep.subr.bf16.mxu0 %v2737_v61 }
 0x512   : > { %v1377_v37 = vadd.f32 %v2126_v11, %v1376_v27  ;;  %v2135_v11 = vld [vmem:[%s667_s1] ss:$0 sm:$0xff] }
 0x513   : > { %1507 = vmatmul.mubr.f32.gmra.mrb[12].mxu0 %v3076_v30  ;;  %v1392_v43 = vmax.f32 %v1382_v42, 0.0 }
 0x514   : > { %1511 = vmatprep.mubr.f32.mxu0 %v1388_v32  ;;  %v1391_v41 = vmax.f32 %v1377_v37, 0.0  ;;  %2740 = vmatpush3.bf16.msra.mxu0 %v2737_v61  ;;  %v2757_v61 = vpack.c.bf16 %v1696_v60, %v1695_v59  ;;  %v1837_v60 = vld [vmem:[%s3426_s20 + $0x40] sm:$0xff] (!%p2138_p2) }
 0x515   : > { %2742 = vmatprep.subr.bf16.mxu0 %v2741_v0 }
 0x517   : > { %1512 = vmatmul.mubr.f32.gmra.mrb[14].mxu0 %v3078_v31 }
 0x518   : > { %1516 = vmatprep.mubr.f32.mxu0 %v1389_v33  ;;  %2744 = vmatpush3.bf16.msra.mxu0 %v2741_v0 }
 0x519   : > { %2746 = vmatprep.subr.bf16.mxu0 %v2745_v3 }
 0x51b   : > { %1517 = vmatmul.mubr.f32.gmra.mrb[16].mxu0 %v3084_v34 }
 0x51c   : > { %1521 = vmatprep.mubr.f32.mxu0 %v1390_v40  ;;  %2748 = vmatpush3.bf16.msra.mxu0 %v2745_v3 }
 0x51d   : > { %2750 = vmatprep.subr.bf16.mxu0 %v2749_v6 }
 0x51f   : > { %1522 = vmatmul.mubr.f32.gmra.mrb[18].mxu0 %v3086_v35 }
 0x520   : > { %1526 = vmatprep.mubr.f32.mxu0 %v1391_v41  ;;  %2752 = vmatpush3.bf16.msra.mxu0 %v2749_v6 }
 0x521   : > { %2754 = vmatprep.subr.bf16.mxu0 %v2753_v9 }
 0x523   : > { %1527 = vmatmul.mubr.f32.gmra.mrb[20].mxu0 %v3093_v38 }
 0x524   : > { %1531 = vmatprep.mubr.f32.mxu0 %v1392_v43  ;;  %2756 = vmatpush3.bf16.msra.mxu0 %v2753_v9 }
 0x525   : > { %2758 = vmatprep.subr.bf16.mxu0 %v2757_v61 }
 0x527   : > { %1532 = vmatmul.mubr.f32.gmra.mrb[22].mxu0 %v3095_v39 }
 0x528   : > { %2760 = vmatpush3.bf16.msra.mxu0 %v2757_v61  ;;  %v1838_v61 = vld [vmem:[%s3426_s20 + $0x48] sm:$0xff] (!%p2138_p2) }
 0x5de   : > { %v2248_v10 = vpop.f32.mrb[8].mxu0 }
 0x5df   : > { %v2249_v12 = vpop.f32.mrb[9].mxu0 }
 0x5e0   : > { %v2250_v13 = vadd.f32 %v2249_v12, %v2248_v10 }
 0x5e2   : > { %v1499_v14 = vadd.f32 %v2250_v13, %v2135_v11  ;;  %v2251_v15 = vpop.f32.mrb[10].mxu0 }
 0x5e3   : > { %v2252_v16 = vpop.f32.mrb[11].mxu0 }
 0x5e4   : > { %v1537_v17 = vmax.f32 %v1499_v14, 0.0  ;;  %v2253_v18 = vadd.f32 %v2252_v16, %v2251_v15 }
 0x5e6   : > { %v1504_v19 = vadd.f32 %v2253_v18, %v2135_v11  ;;  %v2254_v20 = vpop.f32.mrb[12].mxu0  ;;  %2497 = vmatprep.mubr.f32.mxu1 %v1537_v17 }
 0x5e7   : > { %v2255_v21 = vpop.f32.mrb[13].mxu0 }
 0x5e8   : > { %v1538_v22 = vmax.f32 %v1504_v19, 0.0  ;;  %v2256_v23 = vadd.f32 %v2255_v21, %v2254_v20 }
 0x5ea   : > { %v1509_v24 = vadd.f32 %v2256_v23, %v2135_v11  ;;  %v2257_v25 = vpop.f32.mrb[14].mxu0  ;;  %2498 = vmatmul.mubr.f32.vlgmr.msra.gmra.mrb[18].mxu1 %v1538_v22  ;;  %v2137_v23 = vld [vmem:[%s683_s18] ss:$0 sm:$0xff]  ;;  %s3428_s18 = sld [smem:[#allocation14_spill]] (!%p2138_p2) }
 0x5eb   : > { %v2258_v26 = vpop.f32.mrb[15].mxu0 }
 0x5ec   : > { %v1539_v27 = vmax.f32 %v1509_v24, 0.0  ;;  %v2259_v32 = vadd.f32 %v2258_v26, %v2257_v25 }
 0x5ee   : > { %v1514_v33 = vadd.f32 %v2259_v32, %v2135_v11  ;;  %v2260_v36 = vpop.f32.mrb[16].mxu0  ;;  %2500 = vmatprep.mubr.f32.mxu1 %v1539_v27 }
 0x5ef   : > { %v2261_v37 = vpop.f32.mrb[17].mxu0 }
 0x5f0   : > { %v1540_v40 = vmax.f32 %v1514_v33, 0.0  ;;  %v2262_v41 = vadd.f32 %v2261_v37, %v2260_v36 }
 0x5f2   : > { %v1519_v42 = vadd.f32 %v2262_v41, %v2135_v11  ;;  %v2263_v43 = vpop.f32.mrb[18].mxu0  ;;  %2501 = vmatmul.mubr.f32.gmra.mrb[20].mxu1 %v1540_v40 }
 0x5f3   : > { %v2264_v44 = vpop.f32.mrb[19].mxu0 }
 0x5f4   : > { %v1541_v45 = vmax.f32 %v1519_v42, 0.0  ;;  %v2265_v46 = vadd.f32 %v2264_v44, %v2263_v43 }
 0x5f6   : > { %v1524_v47 = vadd.f32 %v2265_v46, %v2135_v11  ;;  %v2266_v48 = vpop.f32.mrb[20].mxu0  ;;  %2503 = vmatprep.mubr.f32.mxu1 %v1541_v45 }
 0x5f7   : > { %v2267_v49 = vpop.f32.mrb[21].mxu0 }
 0x5f8   : > { %v1542_v50 = vmax.f32 %v1524_v47, 0.0  ;;  %v2268_v51 = vadd.f32 %v2267_v49, %v2266_v48 }
 0x5fa   : > { %v1529_v52 = vadd.f32 %v2268_v51, %v2135_v11  ;;  %v2269_v53 = vpop.f32.mrb[22].mxu0  ;;  %2504 = vmatmul.mubr.f32.gmra.mrb[22].mxu1 %v1542_v50 }
 0x5fb   : > { %v2270_v54 = vpop.f32.mrb[23].mxu0 }
 0x5fc   : > { %v1543_v55 = vmax.f32 %v1529_v52, 0.0  ;;  %v2271_v56 = vadd.f32 %v2270_v54, %v2269_v53  ;;  %v1832_v52 = vld [vmem:[%s3426_s20 + $0x18] sm:$0xff] (!%p2138_p2)  ;;  %v1833_v54 = vld [vmem:[%s3426_s20 + $0x20] sm:$0xff] (!%p2138_p2) }
 0x5fe   : > { %v1534_v57 = vadd.f32 %v2271_v56, %v2135_v11  ;;  %2506 = vmatprep.mubr.f32.mxu1 %v1543_v55  ;;  %v1834_v55 = vld [vmem:[%s3426_s20 + $0x28] sm:$0xff] (!%p2138_p2) }
 0x5ff   : > { %v2769_v56 = vpack.c.bf16 (!%p2138_p2), %v1834_v55, %v1833_v54 }
 0x600   : > { %v1544_v58 = vmax.f32 %v1534_v57, 0.0  ;;  %v1835_v57 = vld [vmem:[%s3426_s20 + $0x30] sm:$0xff] (!%p2138_p2) }
 0x602   : > { %2507 = vmatmul.mubr.f32.gmra.mrb[24].mxu1 %v1544_v58  ;;  %v1836_v58 = vld [vmem:[%s3426_s20 + $0x38] sm:$0xff] (!%p2138_p2) }
 0x603   : > { %v2773_v59 = vpack.c.bf16 (!%p2138_p2), %v1836_v58, %v1835_v57 }
 0x6bd   : > { %v2499_v63 = vpop.f32.mrb[18].mxu1 }
 0x6be   : > { %v1640_v0 = vadd.f32 %v2499_v63, %v2136_v62  ;;  %v1634_v1 = vpop.f32.mrb[19].mxu1  ;;  %v1839_v63 = vld [vmem:[%s3426_s20 + $0x50] sm:$0xff] (!%p2138_p2) }
 0x6bf   : > { %v1635_v2 = vadd.f32 %v2136_v62, %v1634_v1 }
 0x6c0   : > { %v1674_v4 = vmax.f32 %v1640_v0, 0.0  ;;  %v1840_v0 = vld [vmem:[%s3426_s20 + $0x58] sm:$0xff] (!%p2138_p2) }
 0x6c1   : > { %v1673_v3 = vmax.f32 %v1635_v2, 0.0  ;;  %v2781_v1 = vpack.c.bf16 (!%p2138_p2), %v1840_v0, %v1839_v63  ;;  %v1841_v2 = vld [vmem:[%s3426_s20 + $0x60] sm:$0xff] (!%p2138_p2) }
 0x6c3   : > { %2541 = vmatprep.mubr.f32.mxu0 %v1673_v3  ;;  %v1842_v3 = vld [vmem:[%s3426_s20 + $0x68] sm:$0xff] (!%p2138_p2) }
 0x6c4   : > { %2542 = vmatmul.mubr.f32.vlgmr.msra.gmra.mrb[24].mxu0 %v1674_v4  ;;  %v2785_v4 = vpack.c.bf16 (!%p2138_p2), %v1842_v3, %v1841_v2 }
 0x6c5   : > { %v2502_v5 = vpop.f32.mrb[20].mxu1 }
 0x6c6   : > { %v1650_v6 = vadd.f32 %v2502_v5, %v2136_v62  ;;  %v1644_v7 = vpop.f32.mrb[21].mxu1  ;;  %v1843_v5 = vld [vmem:[%s3426_s20 + $0x70] sm:$0xff] (!%p2138_p2) }
 0x6c7   : > { %v1645_v8 = vadd.f32 %v2136_v62, %v1644_v7 }
 0x6c8   : > { %v1676_v10 = vmax.f32 %v1650_v6, 0.0  ;;  %v1844_v6 = vld [vmem:[%s3426_s20 + $0x78] sm:$0xff] (!%p2138_p2) }
 0x6c9   : > { %v1675_v9 = vmax.f32 %v1645_v8, 0.0  ;;  %v2789_v7 = vpack.c.bf16 (!%p2138_p2), %v1844_v6, %v1843_v5  ;;  %v2139_v8 = vld [vmem:[%s3427_s9] ss:$0 sm:$0xff] (!%p2138_p2) }
 0x6cb   : > { %2544 = vmatprep.mubr.f32.mxu0 %v1675_v9 }
 0x6cc   : > { %2545 = vmatmul.mubr.f32.gmra.mrb[26].mxu0 %v1676_v10 }
 0x6cd   : > { %v2505_v11 = vpop.f32.mrb[22].mxu1 }
 0x6ce   : > { %v1660_v12 = vadd.f32 %v2505_v11, %v2136_v62  ;;  %v1654_v13 = vpop.f32.mrb[23].mxu1 }
 0x6cf   : > { %v1655_v14 = vadd.f32 %v2136_v62, %v1654_v13 }
 0x6d0   : > { %v1678_v16 = vmax.f32 %v1660_v12, 0.0 }
 0x6d1   : > { %v1677_v15 = vmax.f32 %v1655_v14, 0.0 }
 0x6d3   : > { %2547 = vmatprep.mubr.f32.mxu0 %v1677_v15 }
 0x6d4   : > { %2548 = vmatmul.mubr.f32.gmra.mrb[28].mxu0 %v1678_v16 }
 0x6d5   : > { %v2508_v17 = vpop.f32.mrb[24].mxu1 }
 0x6d6   : > { %v1670_v18 = vadd.f32 %v2508_v17, %v2136_v62  ;;  %v1664_v19 = vpop.f32.mrb[25].mxu1 }
 0x6d7   : > { %v1665_v20 = vadd.f32 %v2136_v62, %v1664_v19  ;;  %v2777_v62 = vpack.c.bf16 (!%p2138_p2), %v1838_v61, %v1837_v60 }
 0x6d8   : > { %v1680_v22 = vmax.f32 %v1670_v18, 0.0 }
 0x6d9   : > { %v1679_v21 = vmax.f32 %v1665_v20, 0.0 }
 0x6db   : > { %2550 = vmatprep.mubr.f32.mxu0 %v1679_v21 }
 0x6dc   : > { %2551 = vmatmul.mubr.f32.gmra.mrb[30].mxu0 %v1680_v22 }
 0x797   : > { %v2543_v24 = vpop.f32.mrb[24].mxu0 }
 0x798   : > { %v1776_v25 = vadd.f32 %v2543_v24, %v2137_v23  ;;  %v1770_v26 = vpop.f32.mrb[25].mxu0 }
 0x799   : > { %v1771_v27 = vadd.f32 %v2137_v23, %v1770_v26 }
 0x79a   : > { %v3276_v32 = vadd.f32 %v1776_v25, %v3074_v29 }
 0x79b   : > { %v1809_v33 = vadd.f32 %v1771_v27, %v3072_v28 }
 0x79c   : > { %1818 = vst [vmem:[#allocation2 + $0x8] sm:$0xff] %v3276_v32 }
 0x79d   : > { %1817 = vst [vmem:[#allocation2] sm:$0xff] %v1809_v33  ;;  %2585 = vmatprep.mubr.f32.mxu0 (!%p2138_p2), %v1809_v33 }
 0x79f   : > { %v2546_v36 = vpop.f32.mrb[26].mxu0 }
 0x7a0   : > { %v1786_v37 = vadd.f32 %v2546_v36, %v2137_v23  ;;  %v1780_v40 = vpop.f32.mrb[27].mxu0 }
 0x7a1   : > { %v1781_v41 = vadd.f32 %v2137_v23, %v1780_v40 }
 0x7a2   : > { %v3281_v42 = vadd.f32 %v1786_v37, %v3078_v31 }
 0x7a3   : > { %v3284_v43 = vadd.f32 %v1781_v41, %v3076_v30 }
 0x7a4   : > { %1820 = vst [vmem:[#allocation2 + $0x18] sm:$0xff] %v3281_v42 }
 0x7a5   : > { %1819 = vst [vmem:[#allocation2 + $0x10] sm:$0xff] %v3284_v43 }
 0x7a7   : > { %v2549_v29 = vpop.f32.mrb[28].mxu0 }
 0x7a8   : > { %v1796_v44 = vadd.f32 %v2549_v29, %v2137_v23  ;;  %v1790_v28 = vpop.f32.mrb[29].mxu0 }
 0x7a9   : > { %v1791_v45 = vadd.f32 %v2137_v23, %v1790_v28 }
 0x7aa   : > { %v3289_v46 = vadd.f32 %v1796_v44, %v3086_v35  ;;  %v1830_v35 = vld [vmem:[%s3426_s20 + $0x8] sm:$0xff] (!%p2138_p2) }
 0x7ab   : > { %v1813_v47 = vadd.f32 %v1791_v45, %v3084_v34  ;;  %v1829_v34 = vld [vmem:[%s3426_s20] sm:$0xff] (!%p2138_p2) }
 0x7ac   : > { %1822 = vst [vmem:[#allocation2 + $0x28] sm:$0xff] %v3289_v46 }
 0x7ad   : > { %1821 = vst [vmem:[#allocation2 + $0x20] sm:$0xff] %v1813_v47  ;;  %2591 = vmatprep.mubr.f32.mxu1 (!%p2138_p2), %v1813_v47 }
 0x7af   : > { %v2552_v31 = vpop.f32.mrb[30].mxu0  ;;  %1828 = sbr.rel (%p2138_p2) target bundleno = 2224 (0x8b0), region = 100 }
 0x7b0   : > { %v1806_v48 = vadd.f32 %v2552_v31, %v2137_v23  ;;  %v1800_v30 = vpop.f32.mrb[31].mxu0 }
 0x7b1   : > { %v1801_v49 = vadd.f32 %v2137_v23, %v1800_v30 }
 0x7b2   : > { %v3294_v50 = vadd.f32 %v1806_v48, %v3095_v39  ;;  %v2761_v39 = vpack.c.bf16 (!%p2138_p2), %v1830_v35, %v1829_v34 }
 0x7b3   : > { %v3297_v51 = vadd.f32 %v1801_v49, %v3093_v38  ;;  %v1831_v38 = vld [vmem:[%s3426_s20 + $0x10] sm:$0xff] (!%p2138_p2) }
 0x7b4   : > { %1824 = vst [vmem:[#allocation2 + $0x38] sm:$0xff] %v3294_v50  ;;  %v2765_v53 = vpack.c.bf16 (!%p2138_p2), %v1832_v52, %v1831_v38  ;;  %2762 = vmatprep.subr.bf16.mxu0 (!%p2138_p2), %v2761_v39  ;;  %2795 = vmatprep.subr.bf16.mxu1 (!%p2138_p2), %v2761_v39 }
 0x7b5   : > { %1823 = vst [vmem:[#allocation2 + $0x30] sm:$0xff] %v3297_v51  ;;  %2764 = vmatpush3.bf16.msra.mxu0 (!%p2138_p2), %v2761_v39  ;;  %2803 = vmatpush3.bf16.msra.mxu1 (!%p2138_p2), %v2761_v39 }
 0x7b6   : > { %2766 = vmatprep.subr.bf16.mxu0 %v2765_v53  ;;  %2796 = vmatprep.subr.bf16.mxu1 %v2765_v53 }
 0x7b9   : > { %2768 = vmatpush3.bf16.msra.mxu0 %v2765_v53  ;;  %2804 = vmatpush3.bf16.msra.mxu1 %v2765_v53 }
 0x7ba   : > { %2770 = vmatprep.subr.bf16.mxu0 %v2769_v56  ;;  %2797 = vmatprep.subr.bf16.mxu1 %v2769_v56 }
 0x7bd   : > { %2772 = vmatpush3.bf16.msra.mxu0 %v2769_v56  ;;  %2805 = vmatpush3.bf16.msra.mxu1 %v2769_v56 }
 0x7be   : > { %2774 = vmatprep.subr.bf16.mxu0 %v2773_v59  ;;  %2798 = vmatprep.subr.bf16.mxu1 %v2773_v59 }
 0x7c1   : > { %2776 = vmatpush3.bf16.msra.mxu0 %v2773_v59  ;;  %2806 = vmatpush3.bf16.msra.mxu1 %v2773_v59 }
 0x7c2   : > { %2778 = vmatprep.subr.bf16.mxu0 %v2777_v62  ;;  %2799 = vmatprep.subr.bf16.mxu1 %v2777_v62 }
 0x7c5   : > { %2780 = vmatpush3.bf16.msra.mxu0 %v2777_v62  ;;  %2807 = vmatpush3.bf16.msra.mxu1 %v2777_v62 }
 0x7c6   : > { %2782 = vmatprep.subr.bf16.mxu0 %v2781_v1  ;;  %2800 = vmatprep.subr.bf16.mxu1 %v2781_v1 }
 0x7c9   : > { %2784 = vmatpush3.bf16.msra.mxu0 %v2781_v1  ;;  %2808 = vmatpush3.bf16.msra.mxu1 %v2781_v1 }
 0x7ca   : > { %2786 = vmatprep.subr.bf16.mxu0 %v2785_v4  ;;  %2801 = vmatprep.subr.bf16.mxu1 %v2785_v4 }
 0x7cd   : > { %2788 = vmatpush3.bf16.msra.mxu0 %v2785_v4  ;;  %2809 = vmatpush3.bf16.msra.mxu1 %v2785_v4 }
 0x7ce   : > { %2790 = vmatprep.subr.bf16.mxu0 %v2789_v7  ;;  %2802 = vmatprep.subr.bf16.mxu1 %v2789_v7 }
 0x7d1   : > { %2792 = vmatpush3.bf16.msra.mxu0 %v2789_v7  ;;  %2810 = vmatpush3.bf16.msra.mxu1 %v2789_v7 }
 0x7d4   : > { %2586 = vmatmul.mubr.f32.vlgmr.msra.gmra.mrb[0].mxu0 %v3276_v32  ;;  %2592 = vmatmul.mubr.f32.vlgmr.msra.gmra.mrb[0].mxu1 %v3289_v46 }
 0x7d5   : > { %2588 = vmatprep.mubr.f32.mxu0 %v3284_v43  ;;  %2594 = vmatprep.mubr.f32.mxu1 %v3297_v51 }
 0x7d8   : > { %2589 = vmatmul.mubr.f32.gmra.mrb[2].mxu0 %v3281_v42  ;;  %2595 = vmatmul.mubr.f32.gmra.mrb[2].mxu1 %v3294_v50 }
 0x8a7   : > { %v2587_v9 = vpop.f32.mrb[0].mxu0  ;;  %v2593_v10 = vpop.f32.mrb[0].mxu1 }
 0x8a8   : > { %v1924_v11 = vadd.f32 %v2587_v9, %v2139_v8  ;;  %v1944_v12 = vadd.f32 %v2593_v10, %v2139_v8  ;;  %v1918_v13 = vpop.f32.mrb[1].mxu0  ;;  %v1938_v14 = vpop.f32.mrb[1].mxu1 }
 0x8a9   : > { %v1919_v15 = vadd.f32 %v2139_v8, %v1918_v13  ;;  %v1939_v16 = vadd.f32 %v2139_v8, %v1938_v14 }
 0x8aa   : > { %1958 = vst [vmem:[%s3428_s18 + $0x8] sm:$0xff] %v1924_v11  ;;  %1962 = vst [vmem:[%s3428_s18 + $0x28] sm:$0xff] %v1944_v12 }
 0x8ab   : > { %1957 = vst [vmem:[%s3428_s18] sm:$0xff] %v1919_v15  ;;  %1961 = vst [vmem:[%s3428_s18 + $0x20] sm:$0xff] %v1939_v16  ;;  %v2590_v17 = vpop.f32.mrb[2].mxu0  ;;  %v2596_v18 = vpop.f32.mrb[2].mxu1 }
 0x8ac   : > { %v1934_v19 = vadd.f32 %v2590_v17, %v2139_v8  ;;  %v1954_v20 = vadd.f32 %v2596_v18, %v2139_v8  ;;  %v1928_v21 = vpop.f32.mrb[3].mxu0  ;;  %v1948_v22 = vpop.f32.mrb[3].mxu1 }
 0x8ad   : > { %v1929_v23 = vadd.f32 %v2139_v8, %v1928_v21  ;;  %v1949_v24 = vadd.f32 %v2139_v8, %v1948_v22 }
 0x8ae   : > { %1960 = vst [vmem:[%s3428_s18 + $0x18] sm:$0xff] %v1934_v19  ;;  %1964 = vst [vmem:[%s3428_s18 + $0x38] sm:$0xff] %v1954_v20 }
 0x8af   : > { %1959 = vst [vmem:[%s3428_s18 + $0x10] sm:$0xff] %v1929_v23  ;;  %1963 = vst [vmem:[%s3428_s18 + $0x30] sm:$0xff] %v1949_v24 }
 0x8b0 PF: > { %s3429_s9 = sld [smem:[#allocation6_spill]] }
 0x8b6   : > { %s28_s24 = sadd.s32 1, %s3429_s9  }
 0x8b7   : > { %p25_p3 = scmp.ge.s32.totalorder %s28_s24, 4  }
 0x8b9   :  { %27 = sbr.rel (!%p25_p3) target bundleno = 10 (0xa), region = 151 }
 0x8c0   :  { %1976 = vsyncpa [#allocation4], 1 }
 0x8c1   :  { %1978 = vsyncpa [#allocation4 + $0x1], 1 }

</bundles_post_ra>
